<compile_context>
chip_gen: v7x
topology: tpu7x:2x2x1
jax: 0.10.0
libtpu: 0.0.40
codegen_flags: <defaults>
</compile_context>

<pallas_src>
import functools

import jax
import jax.numpy as jnp
from jax.experimental import pallas as pl
from jax.experimental.pallas import tpu as pltpu

LANE = 128  # class dim is padded to one full lane width (unmasked stores)


def _round_up(x, m):
    return ((x + m - 1) // m) * m


@functools.lru_cache(maxsize=None)
def _vmem_capacity_bytes():
    """Physical VMEM per core (128 MiB v5e/v6e, 64 MiB v7x); conservative fallback."""
    try:
        return int(pltpu.get_tpu_info().vmem_capacity_bytes)
    except Exception:
        return 64 * 1024 * 1024


@functools.lru_cache(maxsize=None)
def _buffered_supported():
    """Probe (eagerly, once) whether BlockSpec(pipeline_mode=pl.Buffered(1)) lowers
    on this JAX/Mosaic build.  Must be primed outside jit (prepare_* does it)."""
    try:
        with jax.ensure_compile_time_eval():
            def _copy(x_ref, o_ref):
                o_ref[...] = x_ref[...]

            x = jnp.zeros((8, LANE), jnp.float32)
            out = pl.pallas_call(
                _copy,
                out_shape=jax.ShapeDtypeStruct((16, LANE), jnp.float32),
                grid=(2,),
                in_specs=[pl.BlockSpec((8, LANE), lambda i: (0, 0),
                                       pipeline_mode=pl.Buffered(1))],
                out_specs=pl.BlockSpec((8, LANE), lambda i: (i, 0)),
            )(x)
            jax.block_until_ready(out)
        return True
    except Exception:
        return False


# ---------------------------------------------------------------------------
# Kernel 0 (tiny): Y2 = f2 @ W2      -- row-tiled projection before propagation
# ---------------------------------------------------------------------------
def _proj_kernel(f_ref, w_ref, y_ref):
    y_ref[...] = jnp.dot(f_ref[...], w_ref[...],
                         preferred_element_type=jnp.float32).astype(y_ref.dtype)


# ---------------------------------------------------------------------------
# Kernel 1 (hot path): inner hop   Z = f1 @ W1 + A1 @ Y2
#   - the only pass that streams the full (N, N) adjacency; kept f32, HBM-bound
#   - Y2 / W1 are VMEM-resident (constant index map, Buffered(1) when available)
# ---------------------------------------------------------------------------
def _inner_hop_kernel(a1_ref, f1_ref, y2_ref, w1_ref, z_ref):
    z = jnp.dot(f1_ref[...], w1_ref[...], preferred_element_type=jnp.float32)
    z = z + jnp.dot(a1_ref[...], y2_ref[...], preferred_element_type=jnp.float32)
    z_ref[...] = z.astype(z_ref.dtype)


# ---------------------------------------------------------------------------
# Kernel 2: outer hop restricted to the queried rows, reduction tiled over N
#   out[idx] = ori[idx] @ W0 + A1[idx, :] @ Z + b
# ---------------------------------------------------------------------------
def _outer_hop_kernel(a1i_ref, z_ref, orii_ref, w0_ref, b_ref, out_ref, acc_ref):
    k = pl.program_id(0)

    @pl.when(k == 0)
    def _():
        acc_ref[...] = (jnp.dot(orii_ref[...], w0_ref[...],
                                preferred_element_type=jnp.float32) + b_ref[...])

    acc_ref[...] += jnp.dot(a1i_ref[...], z_ref[...],
                            preferred_element_type=jnp.float32)

    @pl.when(k == pl.num_programs(0) - 1)
    def _():
        out_ref[...] = acc_ref[...].astype(out_ref.dtype)


# ---------------------------------------------------------------------------
# Tile pickers (explicit per-chip VMEM budgets, f32 streams)
# ---------------------------------------------------------------------------
def _pick_row_tile(tm_req, n, f, cp, vmem_budget, resident_bufs):
    """Largest kernel-1 row tile that fits the budget; >=2 grid steps for v7x."""
    resident = resident_bufs * (n * cp + f * cp) * 4          # Y2 + W1 blocks
    per_row = (2 * n + 2 * f + 2 * cp) * 4                    # A1/f1/Z rows, double-buffered
    avail = max(vmem_budget - resident, per_row * 8)
    tm_max = max(8, (avail // per_row) // 8 * 8)
    tm = min(tm_req, tm_max)
    if tm >= n:
        tm = n                               # a single full block is always legal
    else:
        tm = max(8, (tm // 8) * 8)
    if n >= 16 and pl.cdiv(n, tm) < 2:       # keep both v7x TensorCores busy
        tm = _round_up((n + 1) // 2, 8)
    return tm


def _pick_k_tile(n, n_rows, f, cp, vmem_budget):
    """Contraction chunk for kernel 2 (multiple of 128 lanes)."""
    resident = (2 * (n_rows * f + f * cp + cp) + 3 * n_rows * cp) * 4
    per_k = 2 * (n_rows + cp) * 4                             # A1[idx] cols + Z rows
    avail = max(vmem_budget - resident, per_k * 128)
    tk = max(128, (avail // per_k) // 128 * 128)
    return min(tk, 4096, _round_up(n, 128))


# ---------------------------------------------------------------------------
# One-time glue (weights are static for SGC inference)
# ---------------------------------------------------------------------------
def prepare_two_order_params(w0, w1, w2, b):
    """Pad the class dim to a full 128-lane slab once (unmasked stores in-kernel)
    and prime the eager hardware probes so the jitted forward stays pure."""
    _vmem_capacity_bytes()
    _buffered_supported()
    f, c = w0.shape

    def pad_w(w):
        return jnp.zeros((f, LANE), jnp.float32).at[:, :c].set(w.astype(jnp.float32))

    bp = jnp.zeros((1, LANE), jnp.float32).at[:, :c].set(b.astype(jnp.float32))
    return pad_w(w0), pad_w(w1), pad_w(w2), bp


# ---------------------------------------------------------------------------
# Forward (query_edges is None):  return out[idx]
# ---------------------------------------------------------------------------
def two_order_forward(one_adj, ori_feat, one_feat, two_feat,
                      w0p, w1p, w2p, bp, idx, *, num_classes, tm=None):
    """out[idx] = ori[idx] @ W0 + A1[idx,:] @ (f1 @ W1 + A1 @ (f2 @ W2)) + b.

    A1 is streamed from HBM in f32 (no per-call cast copy); the 2-hop adjacency
    is never materialized.  Safe to wrap in jax.jit (static: num_classes, tm)
    after prepare_two_order_params() has been called once.
    """
    n, f = ori_feat.shape
    cp = LANE
    c = num_classes
    n_idx = idx.shape[0]
    if n_idx == 0:
        return jnp.zeros((0, c), jnp.float32)

    # ---- per-chip VMEM budgeting (v5e/v6e: 128 MiB phys -> 96 MiB limit;
    #      v7x: 64 MiB phys -> 48 MiB limit), explicit vmem_limit_bytes below.
    vmem_cap = _vmem_capacity_bytes()
    vmem_limit = min(int(vmem_cap * 0.75), 100 * 1024 * 1024)
    budget = int(vmem_limit * 0.8)
    buffered_ok = _buffered_supported()
    resident_bufs = 1 if buffered_ok else 2

    if tm is None:
        tm = 1024 if vmem_cap >= 96 * 1024 * 1024 else 512
    tm = _pick_row_tile(tm, n, f, cp, budget, resident_bufs)
    grid_rows = (pl.cdiv(n, tm),)

    a1 = one_adj.astype(jnp.float32)   # no-op if already f32 (never a bf16 copy)
    f1 = one_feat.astype(jnp.float32)
    f2 = two_feat.astype(jnp.float32)

    row_par = pltpu.CompilerParams(dimension_semantics=("parallel",),
                                   vmem_limit_bytes=vmem_limit)

    # ---- kernel 0: Y2 = f2 @ W2
    y2 = pl.pallas_call(
        _proj_kernel,
        out_shape=jax.ShapeDtypeStruct((n, cp), jnp.float32),
        grid=grid_rows,
        in_specs=[pl.BlockSpec((tm, f), lambda i: (i, 0)),
                  pl.BlockSpec((f, cp), lambda i: (0, 0))],
        out_specs=pl.BlockSpec((tm, cp), lambda i: (i, 0)),
        compiler_params=row_par,
    )(f2, w2p)

    # ---- kernel 1 (hot): Z = f1 @ W1 + A1 @ Y2  (single f32 streaming pass over A1)
    if buffered_ok:
        y2_spec = pl.BlockSpec((n, cp), lambda i: (0, 0), pipeline_mode=pl.Buffered(1))
        w1_spec = pl.BlockSpec((f, cp), lambda i: (0, 0), pipeline_mode=pl.Buffered(1))
    else:
        y2_spec = pl.BlockSpec((n, cp), lambda i: (0, 0))
        w1_spec = pl.BlockSpec((f, cp), lambda i: (0, 0))
    cost = pl.CostEstimate(
        flops=2 * n * n * cp + 2 * n * f * cp,
        transcendentals=0,
        bytes_accessed=4 * (n * n + n * f + 2 * n * cp + f * cp),
    )
    z = pl.pallas_call(
        _inner_hop_kernel,
        out_shape=jax.ShapeDtypeStruct((n, cp), jnp.float32),
        grid=grid_rows,
        in_specs=[pl.BlockSpec((tm, n), lambda i: (i, 0)),   # A1 row tile (streamed)
                  pl.BlockSpec((tm, f), lambda i: (i, 0)),   # f1 row tile
                  y2_spec,                                   # Y2 (resident)
                  w1_spec],                                  # W1 (resident)
        out_specs=pl.BlockSpec((tm, cp), lambda i: (i, 0)),
        compiler_params=row_par,
        cost_estimate=cost,
    )(a1, f1, y2, w1p)

    # ---- only the queried rows feed the outer hop (|idx|*N, never N*N)
    n_rows = max(8, _round_up(n_idx, 8))          # sublane-align the query block (f32)
    idx_pad = jnp.pad(idx, (0, n_rows - n_idx))   # pad with node 0 (always valid)
    a1_idx = a1[idx_pad]                          # (n_rows, N)
    ori_idx = ori_feat.astype(jnp.float32)[idx_pad]

    # ---- kernel 2: gridded contraction over N-chunks with f32 VMEM accumulator
    tk = _pick_k_tile(n, n_rows, f, cp, budget)
    n_round = _round_up(n, tk)
    z_p = jnp.pad(z, ((0, n_round - n), (0, 0)))            # zero rows: no effect
    a1_idx_p = jnp.pad(a1_idx, ((0, 0), (0, n_round - n)))  # zero cols: no effect
    red_par = pltpu.CompilerParams(dimension_semantics=("arbitrary",),
                                   vmem_limit_bytes=vmem_limit)
    out = pl.pallas_call(
        _outer_hop_kernel,
        out_shape=jax.ShapeDtypeStruct((n_rows, cp), jnp.float32),
        grid=(n_round // tk,),
        in_specs=[pl.BlockSpec((n_rows, tk), lambda k: (0, k)),  # A1[idx] col chunk
                  pl.BlockSpec((tk, cp), lambda k: (k, 0)),      # Z row chunk
                  pl.BlockSpec((n_rows, f), lambda k: (0, 0)),   # ori[idx] (resident)
                  pl.BlockSpec((f, cp), lambda k: (0, 0)),       # W0 (resident)
                  pl.BlockSpec((1, cp), lambda k: (0, 0))],      # bias (resident)
        out_specs=pl.BlockSpec((n_rows, cp), lambda k: (0, 0)),
        scratch_shapes=[pltpu.VMEM((n_rows, cp), jnp.float32)],
        compiler_params=red_par,
    )(a1_idx_p, z_p, ori_idx, w0p, bp)

    return out[:n_idx, :c]


def _sym_norm(adj):
    """D^{-1/2} (A + I) D^{-1/2}, dense float32 (setup glue, plain JAX)."""
    n = adj.shape[0]
    a = adj + jnp.eye(n, dtype=jnp.float32)
    deg = jnp.sum(a, axis=1)
    d_inv_sqrt = jnp.where(deg > 0, 1.0 / jnp.sqrt(deg), 0.0)
    return a * d_inv_sqrt[:, None] * d_inv_sqrt[None, :]


if __name__ == "__main__":
    key = jax.random.PRNGKey(0)
    k_adj, k_feat, k_w0, k_w1, k_w2, k_b = jax.random.split(key, 6)

    N = 512       # number of graph nodes
    F = 32        # feature dim
    C = 8         # output classes

    # Deterministic synthetic graph: symmetric random adjacency, sym-normalized.
    raw = (jax.random.uniform(k_adj, (N, N)) > 0.8).astype(jnp.float32)
    raw = jnp.maximum(raw, raw.T)
    one_adj = _sym_norm(raw)              # 1-hop normalized adjacency
    # NOTE: the 2-hop adjacency (one_adj @ one_adj) is never materialized.

    # preprocess() initializes all three feature views from the same matrix.
    feature = jax.random.normal(k_feat, (N, F), dtype=jnp.float32)
    original_feature = feature
    one_processed_feature = feature
    two_processed_feature = feature

    w0 = jax.random.normal(k_w0, (F, C), dtype=jnp.float32) * 0.1
    w1 = jax.random.normal(k_w1, (F, C), dtype=jnp.float32) * 0.1
    w2 = jax.random.normal(k_w2, (F, C), dtype=jnp.float32) * 0.1
    b = jax.random.normal(k_b, (1, C), dtype=jnp.float32) * 0.01

    idx = jnp.arange(10)                  # output[idx] node selection

    # One-time glue + probe priming (weights are static for SGC inference).
    w0p, w1p, w2p, bp = prepare_two_order_params(w0, w1, w2, b)

    fwd = jax.jit(two_order_forward, static_argnames=("num_classes", "tm"))
    out = fwd(one_adj, original_feature, one_processed_feature,
              two_processed_feature, w0p, w1p, w2p, bp, idx, num_classes=C)
    out = jax.block_until_ready(out)

    # Pure-JAX f32 reference with the explicit two-hop adjacency (module math).
    two_adj = one_adj @ one_adj
    ref = (original_feature @ w0
           + (one_adj @ one_processed_feature) @ w1
           + (two_adj @ two_processed_feature) @ w2
           + b)[idx]
    assert out.shape == (10, C)
    assert jnp.allclose(out, ref, atol=2e-2, rtol=2e-2)

    print("KERNEL_OK")
</pallas_src>

<mosaic_0001>
module attributes {stable_mosaic.version = 11 : i64} {
  func.func @_copy(%arg0: i32, %arg1: memref<8x128xf32, #tpu.memory_space<vmem>>, %arg2: memref<8x128xf32, #tpu.memory_space<vmem>>) attributes {dimension_semantics = [#tpu.dimension_semantics<arbitrary>], iteration_bounds = array<i64: 2>, scalar_prefetch = 0 : i64, scratch_operands = 0 : i64, tpu.core_type = #tpu.core_type<tc>, window_params = [{pipeline_mode = #tpu.pipeline_mode<synchronous>, transform_indices = @transform_0, window_bounds = array<i64: 8, 128>}, {transform_indices = @transform_1, window_bounds = array<i64: 8, 128>}]} {
    %c0 = arith.constant 0 : index
    %c0_0 = arith.constant 0 : index
    %0 = vector.load %arg1[%c0, %c0_0] : memref<8x128xf32, #tpu.memory_space<vmem>>, vector<8x128xf32>
    %c0_1 = arith.constant 0 : index
    %c0_2 = arith.constant 0 : index
    %1 = vector.load %arg2[%c0_1, %c0_2] : memref<8x128xf32, #tpu.memory_space<vmem>>, vector<8x128xf32>
    tpu.vector_store %arg2[%c0_1, %c0_2], %0 {strides = array<i32>} : memref<8x128xf32, #tpu.memory_space<vmem>>, vector<8x128xf32>,
    return
  }
  func.func @transform_0(%arg0: i32) -> (i32, i32) {
    %c0_i32 = arith.constant 0 : i32
    %c0_i32_0 = arith.constant 0 : i32
    %c0_i32_1 = arith.constant 0 : i32
    return %c0_i32, %c0_i32_0 : i32, i32
  }
  func.func @transform_1(%arg0: i32) -> (i32, i32) {
    %c0_i32 = arith.constant 0 : i32
    %c0_i32_0 = arith.constant 0 : i32
    return %arg0, %c0_i32 : i32, i32
  }
}

module attributes {stable_mosaic.version = 11 : i64} {
  func.func @_inner_hop_kernel(%arg0: i32, %arg1: memref<256x512xf32, #tpu.memory_space<vmem>>, %arg2: memref<256x32xf32, #tpu.memory_space<vmem>>, %arg3: memref<512x128xf32, #tpu.memory_space<vmem>>, %arg4: memref<32x128xf32, #tpu.memory_space<vmem>>, %arg5: memref<256x128xf32, #tpu.memory_space<vmem>>) attributes {dimension_semantics = [#tpu.dimension_semantics<parallel>], iteration_bounds = array<i64: 2>, scalar_prefetch = 0 : i64, scratch_operands = 0 : i64, tpu.core_type = #tpu.core_type<tc>, window_params = [{transform_indices = @transform_0, window_bounds = array<i64: 256, 512>}, {transform_indices = @transform_1, window_bounds = array<i64: 256, 32>}, {pipeline_mode = #tpu.pipeline_mode<synchronous>, transform_indices = @transform_2, window_bounds = array<i64: 512, 128>}, {pipeline_mode = #tpu.pipeline_mode<synchronous>, transform_indices = @transform_3, window_bounds = array<i64: 32, 128>}, {transform_indices = @transform_4, window_bounds = array<i64: 256, 128>}]} {
    %c0 = arith.constant 0 : index
    %c0_0 = arith.constant 0 : index
    %0 = vector.load %arg2[%c0, %c0_0] : memref<256x32xf32, #tpu.memory_space<vmem>>, vector<256x32xf32>
    %c0_1 = arith.constant 0 : index
    %c0_2 = arith.constant 0 : index
    %1 = vector.load %arg4[%c0_1, %c0_2] : memref<32x128xf32, #tpu.memory_space<vmem>>, vector<32x128xf32>
    %cst = arith.constant dense<0.000000e+00> : vector<256x128xf32>
    %2 = tpu.matmul %0, %1, %cst {dimension_numbers = #tpu.dot_dimension_numbers<[1], [0], [0], [1], [0, 0, 1, 1], [], []>} : vector<256x32xf32>, vector<32x128xf32>, vector<256x128xf32> -> vector<256x128xf32>
    %c0_3 = arith.constant 0 : index
    %c0_4 = arith.constant 0 : index
    %3 = vector.load %arg1[%c0_3, %c0_4] : memref<256x512xf32, #tpu.memory_space<vmem>>, vector<256x512xf32>
    %c0_5 = arith.constant 0 : index
    %c0_6 = arith.constant 0 : index
    %4 = vector.load %arg3[%c0_5, %c0_6] : memref<512x128xf32, #tpu.memory_space<vmem>>, vector<512x128xf32>
    %cst_7 = arith.constant dense<0.000000e+00> : vector<256x128xf32>
    %5 = tpu.matmul %3, %4, %cst_7 {dimension_numbers = #tpu.dot_dimension_numbers<[1], [0], [0], [1], [0, 0, 1, 1], [], []>} : vector<256x512xf32>, vector<512x128xf32>, vector<256x128xf32> -> vector<256x128xf32>
    %6 = arith.addf %2, %5 : vector<256x128xf32>
    %c0_8 = arith.constant 0 : index
    %c0_9 = arith.constant 0 : index
    %7 = vector.load %arg5[%c0_8, %c0_9] : memref<256x128xf32, #tpu.memory_space<vmem>>, vector<256x128xf32>
    tpu.vector_store %arg5[%c0_8, %c0_9], %6 {strides = array<i32>} : memref<256x128xf32, #tpu.memory_space<vmem>>, vector<256x128xf32>,
    return
  }
  func.func @transform_0(%arg0: i32) -> (i32, i32) {
    %c0_i32 = arith.constant 0 : i32
    %c0_i32_0 = arith.constant 0 : i32
    return %arg0, %c0_i32 : i32, i32
  }
  func.func @transform_1(%arg0: i32) -> (i32, i32) {
    %c0_i32 = arith.constant 0 : i32
    %c0_i32_0 = arith.constant 0 : i32
    return %arg0, %c0_i32 : i32, i32
  }
  func.func @transform_2(%arg0: i32) -> (i32, i32) {
    %c0_i32 = arith.constant 0 : i32
    %c0_i32_0 = arith.constant 0 : i32
    %c0_i32_1 = arith.constant 0 : i32
    return %c0_i32, %c0_i32_0 : i32, i32
  }
  func.func @transform_3(%arg0: i32) -> (i32, i32) {
    %c0_i32 = arith.constant 0 : i32
    %c0_i32_0 = arith.constant 0 : i32
    %c0_i32_1 = arith.constant 0 : i32
    return %c0_i32, %c0_i32_0 : i32, i32
  }
  func.func @transform_4(%arg0: i32) -> (i32, i32) {
    %c0_i32 = arith.constant 0 : i32
    %c0_i32_0 = arith.constant 0 : i32
    return %arg0, %c0_i32 : i32, i32
  }
}

module attributes {stable_mosaic.version = 11 : i64} {
  func.func @_proj_kernel(%arg0: i32, %arg1: memref<256x32xf32, #tpu.memory_space<vmem>>, %arg2: memref<32x128xf32, #tpu.memory_space<vmem>>, %arg3: memref<256x128xf32, #tpu.memory_space<vmem>>) attributes {dimension_semantics = [#tpu.dimension_semantics<parallel>], iteration_bounds = array<i64: 2>, scalar_prefetch = 0 : i64, scratch_operands = 0 : i64, tpu.core_type = #tpu.core_type<tc>, window_params = [{transform_indices = @transform_0, window_bounds = array<i64: 256, 32>}, {pipeline_mode = #tpu.pipeline_mode<synchronous>, transform_indices = @transform_1, window_bounds = array<i64: 32, 128>}, {transform_indices = @transform_2, window_bounds = array<i64: 256, 128>}]} {
    %c0 = arith.constant 0 : index
    %c0_0 = arith.constant 0 : index
    %0 = vector.load %arg1[%c0, %c0_0] : memref<256x32xf32, #tpu.memory_space<vmem>>, vector<256x32xf32>
    %c0_1 = arith.constant 0 : index
    %c0_2 = arith.constant 0 : index
    %1 = vector.load %arg2[%c0_1, %c0_2] : memref<32x128xf32, #tpu.memory_space<vmem>>, vector<32x128xf32>
    %cst = arith.constant dense<0.000000e+00> : vector<256x128xf32>
    %2 = tpu.matmul %0, %1, %cst {dimension_numbers = #tpu.dot_dimension_numbers<[1], [0], [0], [1], [0, 0, 1, 1], [], []>} : vector<256x32xf32>, vector<32x128xf32>, vector<256x128xf32> -> vector<256x128xf32>
    %c0_3 = arith.constant 0 : index
    %c0_4 = arith.constant 0 : index
    %3 = vector.load %arg3[%c0_3, %c0_4] : memref<256x128xf32, #tpu.memory_space<vmem>>, vector<256x128xf32>
    tpu.vector_store %arg3[%c0_3, %c0_4], %2 {strides = array<i32>} : memref<256x128xf32, #tpu.memory_space<vmem>>, vector<256x128xf32>,
    return
  }
  func.func @transform_0(%arg0: i32) -> (i32, i32) {
    %c0_i32 = arith.constant 0 : i32
    %c0_i32_0 = arith.constant 0 : i32
    return %arg0, %c0_i32 : i32, i32
  }
  func.func @transform_1(%arg0: i32) -> (i32, i32) {
    %c0_i32 = arith.constant 0 : i32
    %c0_i32_0 = arith.constant 0 : i32
    %c0_i32_1 = arith.constant 0 : i32
    return %c0_i32, %c0_i32_0 : i32, i32
  }
  func.func @transform_2(%arg0: i32) -> (i32, i32) {
    %c0_i32 = arith.constant 0 : i32
    %c0_i32_0 = arith.constant 0 : i32
    return %arg0, %c0_i32 : i32, i32
  }
}

module attributes {stable_mosaic.version = 11 : i64} {
  func.func @_outer_hop_kernel(%arg0: i32, %arg1: memref<16x512xf32, #tpu.memory_space<vmem>>, %arg2: memref<512x128xf32, #tpu.memory_space<vmem>>, %arg3: memref<16x32xf32, #tpu.memory_space<vmem>>, %arg4: memref<32x128xf32, #tpu.memory_space<vmem>>, %arg5: memref<1x128xf32, #tpu.memory_space<vmem>>, %arg6: memref<16x128xf32, #tpu.memory_space<vmem>>, %arg7: memref<16x128xf32, #tpu.memory_space<vmem>>) attributes {dimension_semantics = [#tpu.dimension_semantics<arbitrary>], iteration_bounds = array<i64: 1>, scalar_prefetch = 0 : i64, scratch_operands = 1 : i64, tpu.core_type = #tpu.core_type<tc>, window_params = [{transform_indices = @transform_0, window_bounds = array<i64: 16, 512>}, {transform_indices = @transform_1, window_bounds = array<i64: 512, 128>}, {pipeline_mode = #tpu.pipeline_mode<synchronous>, transform_indices = @transform_2, window_bounds = array<i64: 16, 32>}, {pipeline_mode = #tpu.pipeline_mode<synchronous>, transform_indices = @transform_3, window_bounds = array<i64: 32, 128>}, {pipeline_mode = #tpu.pipeline_mode<synchronous>, transform_indices = @transform_4, window_bounds = array<i64: 1, 128>}, {pipeline_mode = #tpu.pipeline_mode<synchronous>, transform_indices = @transform_5, window_bounds = array<i64: 16, 128>}]} {
    %c0_i32 = arith.constant 0 : i32
    %0 = arith.cmpi eq, %arg0, %c0_i32 : i32
    %1 = arith.extui %0 : i1 to i32
    %c0_i32_0 = arith.constant 0 : i32
    %2 = arith.cmpi ne, %1, %c0_i32_0 : i32
    scf.if %2 {
      %c0_10 = arith.constant 0 : index
      %c0_11 = arith.constant 0 : index
      %12 = vector.load %arg3[%c0_10, %c0_11] : memref<16x32xf32, #tpu.memory_space<vmem>>, vector<16x32xf32>
      %c0_12 = arith.constant 0 : index
      %c0_13 = arith.constant 0 : index
      %13 = vector.load %arg4[%c0_12, %c0_13] : memref<32x128xf32, #tpu.memory_space<vmem>>, vector<32x128xf32>
      %cst_14 = arith.constant dense<0.000000e+00> : vector<16x128xf32>
      %14 = tpu.matmul %12, %13, %cst_14 {dimension_numbers = #tpu.dot_dimension_numbers<[1], [0], [0], [1], [0, 0, 1, 1], [], []>} : vector<16x32xf32>, vector<32x128xf32>, vector<16x128xf32> -> vector<16x128xf32>
      %c0_15 = arith.constant 0 : index
      %c0_16 = arith.constant 0 : index
      %15 = vector.load %arg5[%c0_15, %c0_16] : memref<1x128xf32, #tpu.memory_space<vmem>>, vector<1x128xf32>
      %16 = vector.broadcast %15 : vector<1x128xf32> to vector<16x128xf32>
      %17 = arith.addf %14, %16 : vector<16x128xf32>
      %c0_17 = arith.constant 0 : index
      %c0_18 = arith.constant 0 : index
      %18 = vector.load %arg7[%c0_17, %c0_18] : memref<16x128xf32, #tpu.memory_space<vmem>>, vector<16x128xf32>
      tpu.vector_store %arg7[%c0_17, %c0_18], %17 {strides = array<i32>} : memref<16x128xf32, #tpu.memory_space<vmem>>, vector<16x128xf32>,
    } else {
    }
    %c0 = arith.constant 0 : index
    %c0_1 = arith.constant 0 : index
    %3 = vector.load %arg7[%c0, %c0_1] : memref<16x128xf32, #tpu.memory_space<vmem>>, vector<16x128xf32>
    %c0_2 = arith.constant 0 : index
    %c0_3 = arith.constant 0 : index
    %4 = vector.load %arg1[%c0_2, %c0_3] : memref<16x512xf32, #tpu.memory_space<vmem>>, vector<16x512xf32>
    %c0_4 = arith.constant 0 : index
    %c0_5 = arith.constant 0 : index
    %5 = vector.load %arg2[%c0_4, %c0_5] : memref<512x128xf32, #tpu.memory_space<vmem>>, vector<512x128xf32>
    %cst = arith.constant dense<0.000000e+00> : vector<16x128xf32>
    %6 = tpu.matmul %4, %5, %cst {dimension_numbers = #tpu.dot_dimension_numbers<[1], [0], [0], [1], [0, 0, 1, 1], [], []>} : vector<16x512xf32>, vector<512x128xf32>, vector<16x128xf32> -> vector<16x128xf32>
    %7 = arith.addf %3, %6 : vector<16x128xf32>
    %c0_6 = arith.constant 0 : index
    %c0_7 = arith.constant 0 : index
    %8 = vector.load %arg7[%c0_6, %c0_7] : memref<16x128xf32, #tpu.memory_space<vmem>>, vector<16x128xf32>
    tpu.vector_store %arg7[%c0_6, %c0_7], %7 {strides = array<i32>} : memref<16x128xf32, #tpu.memory_space<vmem>>, vector<16x128xf32>,
    %c0_i32_8 = arith.constant 0 : i32
    %9 = arith.cmpi eq, %arg0, %c0_i32_8 : i32
    %10 = arith.extui %9 : i1 to i32
    %c0_i32_9 = arith.constant 0 : i32
    %11 = arith.cmpi ne, %10, %c0_i32_9 : i32
    scf.if %11 {
      %c0_10 = arith.constant 0 : index
      %c0_11 = arith.constant 0 : index
      %12 = vector.load %arg7[%c0_10, %c0_11] : memref<16x128xf32, #tpu.memory_space<vmem>>, vector<16x128xf32>
      %c0_12 = arith.constant 0 : index
      %c0_13 = arith.constant 0 : index
      %13 = vector.load %arg6[%c0_12, %c0_13] : memref<16x128xf32, #tpu.memory_space<vmem>>, vector<16x128xf32>
      tpu.vector_store %arg6[%c0_12, %c0_13], %12 {strides = array<i32>} : memref<16x128xf32, #tpu.memory_space<vmem>>, vector<16x128xf32>,
    } else {
    }
    return
  }
  func.func @transform_0(%arg0: i32) -> (i32, i32) {
    %c0_i32 = arith.constant 0 : i32
    %c0_i32_0 = arith.constant 0 : i32
    return %c0_i32, %arg0 : i32, i32
  }
  func.func @transform_1(%arg0: i32) -> (i32, i32) {
    %c0_i32 = arith.constant 0 : i32
    %c0_i32_0 = arith.constant 0 : i32
    return %arg0, %c0_i32 : i32, i32
  }
  func.func @transform_2(%arg0: i32) -> (i32, i32) {
    %c0_i32 = arith.constant 0 : i32
    %c0_i32_0 = arith.constant 0 : i32
    %c0_i32_1 = arith.constant 0 : i32
    return %c0_i32, %c0_i32_0 : i32, i32
  }
  func.func @transform_3(%arg0: i32) -> (i32, i32) {
    %c0_i32 = arith.constant 0 : i32
    %c0_i32_0 = arith.constant 0 : i32
    %c0_i32_1 = arith.constant 0 : i32
    return %c0_i32, %c0_i32_0 : i32, i32
  }
  func.func @transform_4(%arg0: i32) -> (i32, i32) {
    %c0_i32 = arith.constant 0 : i32
    %c0_i32_0 = arith.constant 0 : i32
    %c0_i32_1 = arith.constant 0 : i32
    return %c0_i32, %c0_i32_0 : i32, i32
  }
  func.func @transform_5(%arg0: i32) -> (i32, i32) {
    %c0_i32 = arith.constant 0 : i32
    %c0_i32_0 = arith.constant 0 : i32
    %c0_i32_1 = arith.constant 0 : i32
    return %c0_i32, %c0_i32_0 : i32, i32
  }
}

</mosaic_0001>

<bundles_post_ra>
// kernel: tpu_custom_call.1
= control target key start
LH: loop header
LB: loop body
LE: loop exit
PB: predicated region body
PF: predicated region fallthrough
CT: control target
= control target key end

     0   :  { %6 = vsyncpa [#allocation3], 0  ;;  %s481_s0 = inlined_call_operand.hbm [shape: f32[8,128], index: 0, kind: input, shape index: {}]   ;;  %s482_s1 = inlined_call_operand.hbm [shape: f32[16,128], index: 1, kind: output, shape index: {}]  }
   0x1   :  { %7 = vsyncpa [#allocation4], 0 }
   0x2   :  { %9 = vsyncpa [#allocation4 + $0x1], 0  ;;  %s351_s6 = smov 0   ;;  %s353_s7 = smov 0  }
   0x3   :  { %s355_s8 = smov 0   ;;  %s357_s9 = smov 0  }
   0x4 LB: > { %s372_s10 = sadd.s32 4294967295, %s337_s9   ;;  %s183_s11 = sadd.s32 4294967294, %s337_s9   ;;  %s337_s9 = sphi %s357_s9, %s498_s9   ;;  %s333_s8 = sphi %s355_s8, %s497_s8   ;;  %s329_s7 = sphi %s353_s7, %s496_s7   ;;  %s325_s6 = sphi %s351_s6, %s495_s6  }
   0x5   : > { %s376_s12 = sadd.s32 1, %s337_s9   ;;  %s43_s13 = sadd.s32 1, %s333_s8 }
   0x6   : > { %s40_s14 = ssub.s32 %s337_s9, %s376_s12  ;;  %p53_p0 = scmp.ne.s32.totalorder %s333_s8, %s329_s7 }
   0x7   : > { %p41_p1 = scmp.eq.s32.totalorder %s40_s14, 0  ;;  %p54_p2 = scmp.eq.s32.totalorder %s372_s10, 1 }
   0x8   : > { %p59_p3 = scmp.ne.s32.totalorder %s329_s7, %s325_s6  ;;  %p60_p4 = scmp.eq.s32.totalorder %s183_s11, 1 }
   0x9   : > { %s387_s15 = scalar_select %p41_p1, %s333_s8, %s43_s13  }
   0xa   : > { %p389_p5 = por %p54_p2, %p53_p0  ;;  %p393_p6 = por %p60_p4, %p59_p3 }
   0xb   : > { %p184_p7 = scmp.ge.s32.totalorder %s337_s9, 1  ;;  %p67_p8 = scmp.lt.s32.totalorder %s337_s9, 3 }
   0xc   : > { %s486_s16 = scalar_select %p389_p5, 1, 0 }
   0xd   : > { %s487_s17 = scalar_select %p393_p6, 1, 0 }
   0xe   : > { %p483_p9 = scmp.eq.s32.totalorder %s372_s10, 0  ;;  %p400_p10 = pnand %p184_p7, %p67_p8 }
   0xf   : > { %s339_s19 = smov [#allocation2]   ;;  %s243_s24 = scalar_lea.hbm %s481_s0, 128 }
  0x10   : > { %s488_s18 = scalar_select %p400_p10, 1, 0 }
  0x11   : > { %s80_s20 = sshll.u32 %s339_s19, 4  ;;  %p199_p11 = pneg %p400_p10  ;;  %s81_s20 = int_to_ptr.vmem [resolvable:$true] %s80_s20 }
  0x12   : > { %p244_p13 = scmp.ne.s32.totalorder %s481_s0, %s243_s24  ;;  %p250_p3 = scmp.lt.u32.totalorder %s243_s24, %s481_s0 }
  0x13   : > { %p408_p12 = pnand %p483_p9, %p199_p11 }
  0x15   : > { %p245_p0 = pneg %p408_p12 }
  0x17   : > { %p246_p1 = pnand %p245_p0, %p244_p13 }
  0x19   : > { %p247_p2 = pneg %p246_p1 }
  0x1b   : > { %p252_p4 = pnand %p250_p3, %p247_p2 }
  0x1d   : > { %255 = shalt.err (!%p252_p4)
}
  0x1e   : > { %s256_s29 = scalar_lea.vmem %s81_s20, 128  ;;  %p264_p9 = scmp.lt.s32.totalorder %s81_s20, %s81_s20 }
  0x1f   : > { %p257_p7 = scmp.ne.s32.totalorder %s81_s20, %s256_s29  ;;  %p265_p6 = scmp.lt.s32.totalorder %s256_s29, %s256_s29 }
  0x21   : > { %p259_p8 = pnand %p257_p7, %p245_p0  ;;  %p266_p5 = por %p265_p6, %p264_p9 }
  0x23   : > { %p260_p11 = pneg %p259_p8 }
  0x25   : > { %p267_p10 = pnand %p266_p5, %p260_p11 }
  0x27   : > { %270 = shalt.err (!%p267_p10)
}
  0x28   : > { %202 = dma.hbm_to_vmem [thread:$0]  (!%p408_p12), %s481_s0, 128, %s81_s20, [#allocation3]  }
  0x29   : > { %p490_p13 = scmp.ne.s32.totalorder %s488_s18, 0 }
  0x2a   : > { %p491_p1 = scmp.eq.s32.totalorder (!%p490_p13), %s372_s10, 0 }
  0x2b   : > { %93 = sbr.rel (%p490_p13) target bundleno = 77 (0x4d), region = 24 }
  0x32   : > { %316 = dma.done.wait (%p491_p1), [#allocation3], 128   ;;  %p492_p0 = pmov %p491_p1 }
  0x33   : > { %s105_s3 = sand.u32 1, %s329_s7   ;;  %s190_s13 = sshll.u32 %s372_s10, 7  ;;  %v108_v0 = vld [vmem:[#allocation2] sm:$0xff] }
  0x34   : > { %318 = vsyncadd (%p492_p0), [#allocation3], 4294967168  ;;  %s188_s4 = sshll.u32 %s105_s3, 3  ;;  %s441_s18 = scalar_lea.hbm %s482_s1, %s190_s13 }
  0x35   : > { %s107_s5 = scalar_lea.vmem [#allocation5], %s188_s4  ;;  %s111_s20 = scalar_lea.sflag [#allocation4], %s105_s3 }
  0x36   : > { %s124_s11 = sshll.u32 %s107_s5, 4  ;;  %109 = vst [vmem:[%s107_s5] sm:$0xff] %v108_v0  ;;  %p493_p6 = scmp.ne.s32.totalorder %s486_s16, 0  ;;  %s436_s11 = int_to_ptr.vmem [resolvable:$true] %s124_s11 }
  0x37   : > { %s271_s21 = scalar_lea.vmem %s436_s11, 128  ;;  %s340_s22 = smov [#allocation5]  }
  0x38   : > { %p272_p5 = scmp.ne.s32.totalorder %s436_s11, %s271_s21  ;;  %s275_s10 = sshll.u32 %s340_s22, 4  ;;  %s276_s10 = int_to_ptr.vmem [resolvable:$false] %s275_s10 }
  0x39   : > { %s277_s23 = scalar_lea.vmem %s276_s10, 256  ;;  %p278_p12 = scmp.lt.s32.totalorder %s436_s11, %s276_s10 }
  0x3a   : > { %p273_p9 = pnand %p272_p5, %p493_p6  ;;  %p279_p2 = scmp.lt.s32.totalorder %s277_s23, %s271_s21 }
  0x3c   : > { %p274_p10 = pneg %p273_p9  ;;  %p280_p3 = por %p279_p2, %p278_p12 }
  0x3e   : > { %p281_p4 = pnand %p280_p3, %p274_p10 }
  0x40   : > { %284 = shalt.err (!%p281_p4)
}
  0x41   : > { %s285_s24 = scalar_lea.hbm %s441_s18, 128  ;;  %s289_s27 = scalar_lea.hbm %s482_s1, 256 }
  0x42   : > { %p286_p7 = scmp.ne.s32.totalorder %s441_s18, %s285_s24  ;;  %p290_p13 = scmp.lt.u32.totalorder %s441_s18, %s482_s1 }
  0x43   : > { %p291_p1 = scmp.lt.u32.totalorder %s289_s27, %s285_s24  ;;  %p293_p5 = scmp.lt.u32.totalorder %s285_s24, %s441_s18 }
  0x44   : > { %p287_p8 = pnand %p286_p7, %p493_p6 }
  0x45   : > { %p292_p0 = por %p291_p1, %p290_p13 }
  0x46   : > { %p288_p11 = pneg %p287_p8 }
  0x47   : > { %p294_p9 = por %p293_p5, %p292_p0 }
  0x49   : > { %p295_p10 = pnand %p294_p9, %p288_p11 }
  0x4b   : > { %298 = shalt.err (!%p295_p10)
}
  0x4c   : > { %197 = dma.vmem_to_hbm [thread:$0]  (%p493_p6), %s436_s11, 128, %s441_s18, %s111_s20  }
  0x4d PF: > { %p209_p12 = scmp.ge.s32.totalorder %s337_s9, 2  ;;  %s136_s30 = sand.u32 1, %s325_s6  }
  0x4e   : > { %p494_p2 = scmp.ne.s32.totalorder %s487_s17, 0  ;;  %s137_s2 = scalar_lea.sflag [#allocation4], %s136_s30 }
  0x50   : > { %p204_p3 = pnand %p209_p12, %p494_p2 }
  0x52   : > { %320 = dma.done.wait (!%p204_p3), %s137_s2, 128  }
  0x53   : > { %322 = vsyncadd (!%p204_p3), %s137_s2, 4294967168  ;;  %p12_p4 = scmp.ge.s32.totalorder %s376_s12, 4   ;;  %s495_s6 = smov %s329_s7 }
  0x54   : > { %s496_s7 = smov %s333_s8  ;;  %s497_s8 = smov %s387_s15 }
  0x55   : > { %s498_s9 = smov %s376_s12  ;;  %14 = sbr.rel (!%p12_p4) target bundleno = 4 (0x4), region = 61 }
  0x5c   :  { %142 = vsyncpa [#allocation3], 1 }
  0x5d   :  { %144 = vsyncpa [#allocation3 + $0x1], 1 }
  0x5e   :  { %145 = vsyncpa [#allocation4], 1 }
  0x5f   :  { %147 = vsyncpa [#allocation4 + $0x1], 1 }

// kernel: two_order_forward.3
= control target key start
LH: loop header
LB: loop body
LE: loop exit
PB: predicated region body
PF: predicated region fallthrough
CT: control target
= control target key end

     0   :  { %7 = vsyncpa [#allocation3], 0  ;;  %s848_s9 = smov 0   ;;  %s1014_s0 = inlined_call_operand.vmem [shape: f32[512,32], index: 0, kind: input, shape index: {}]   ;;  %s1015_s1 = inlined_call_operand.hbm [shape: f32[32,128], index: 1, kind: input, shape index: {}]   ;;  %s1016_s2 = inlined_call_operand.vmem [shape: f32[512,128], index: 2, kind: output, shape index: {}]  }
   0x1 LB: > { %s620_s10 = sadd.s32 4294967295, %s828_s9   ;;  %p622_p0 = scmp.ge.s32.totalorder %s828_s9, 1  ;;  %s828_s9 = sphi %s848_s9, %s13_s9  }
   0x2   : > { %p91_p1 = scmp.lt.s32.totalorder %s828_s9, 3  ;;  %s830_s11 = smov [#allocation2]  }
   0x3   : > { %s103_s12 = sshll.u32 %s830_s11, 4  ;;  %p862_p3 = scmp.eq.s32.totalorder %s620_s10, 0  ;;  %s104_s12 = int_to_ptr.vmem [resolvable:$true] %s103_s12 }
   0x4   : > { %p856_p2 = pnand %p622_p0, %p91_p1  ;;  %s790_s18 = scalar_lea.hbm %s1015_s1, 512 }
   0x5   : > { %s1021_s14 = scalar_select %p862_p3, 1, 0 }
   0x6   : > { %s1020_s13 = scalar_select %p856_p2, 1, 0 }
   0x7   : > { %p773_p4 = pneg %p856_p2  ;;  %p791_p6 = scmp.ne.s32.totalorder %s1015_s1, %s790_s18 }
   0x8   : > { %p797_p10 = scmp.lt.u32.totalorder %s790_s18, %s1015_s1 }
   0x9   : > { %p870_p5 = pnand %p862_p3, %p773_p4 }
   0xb   : > { %p792_p7 = pneg %p870_p5 }
   0xd   : > { %p793_p8 = pnand %p792_p7, %p791_p6 }
   0xf   : > { %p794_p9 = pneg %p793_p8 }
  0x11   : > { %p799_p11 = pnand %p797_p10, %p794_p9 }
  0x13   : > { %802 = shalt.err (!%p799_p11)
}
  0x14   : > { %s803_s23 = scalar_lea.vmem %s104_s12, 512  ;;  %p811_p1 = scmp.lt.s32.totalorder %s104_s12, %s104_s12 }
  0x15   : > { %p804_p12 = scmp.ne.s32.totalorder %s104_s12, %s803_s23  ;;  %p812_p4 = scmp.lt.s32.totalorder %s803_s23, %s803_s23 }
  0x17   : > { %p806_p13 = pnand %p804_p12, %p792_p7  ;;  %p813_p3 = por %p812_p4, %p811_p1 }
  0x19   : > { %p807_p0 = pneg %p806_p13 }
  0x1b   : > { %p814_p2 = pnand %p813_p3, %p807_p0 }
  0x1d   : > { %817 = shalt.err (!%p814_p2)
}
  0x1e   : > { %s831_s24 = smov 128   ;;  %s832_s25 = smov 8  }
  0x1f   : > { %776 = dma.hbm_to_vmem [thread:$0]  (!%p870_p5), %s1015_s1, 512, %s104_s12, [#allocation3], %s831_s24, %s831_s24, %s832_s25  }
  0x20   : > { %p1023_p6 = scmp.ne.s32.totalorder %s1020_s13, 0 }
  0x21   : > { %p1024_p8 = scmp.ne.s32.totalorder (!%p1023_p6), %s1021_s14, 0 }
  0x22   : > { %128 = sbr.rel (%p1023_p6) target bundleno = 296 (0x128), region = 28 }
  0x29   : > { %823 = dma.done.wait (%p1024_p8), [#allocation3], 512  }
  0x2a   : > { %825 = vsyncadd (%p1024_p8), [#allocation3], 4294966784  ;;  %s627_s28 = sshll.u32 %s620_s10, 5  ;;  %vm198_vm0 = vcmask 261120   ;;  %v194_v0 = vld [vmem:[#allocation2] sm:$0xff]  ;;  %v195_v1 = vld [vmem:[#allocation2 + $0x8] sm:$0xff] }
  0x2b   : > { %p151_p2 = scmp.lt.s32.totalorder %s627_s28, 63  ;;  %v196_v2 = vld [vmem:[#allocation2 + $0x10] sm:$0xff]  ;;  %v757_v3 = vpack.c.bf16 %v195_v1, %v194_v0  ;;  %v197_v4 = vld [vmem:[#allocation2 + $0x18] sm:$0xff] }
  0x2c   : > { %v761_v7 = vpack.c.bf16 %v197_v4, %v196_v2 }
  0x2d   : > { %s1026_s28 = smov (!%p151_p2, %s627_s28), 63  ;;  %758 = vmatprep.subr.bf16.mxu0 %v757_v3  ;;  %765 = vmatprep.subr.bf16.mxu1 %v757_v3 }
  0x2e   : > { %s628_s29 = sshll.u32 %s1026_s28, 3  ;;  %760 = vmatpush3.bf16.msra.mxu0 %v757_v3  ;;  %767 = vmatpush3.bf16.msra.mxu1 %v757_v3 }
  0x2f   : > { %s906_s4 = scalar_lea.vmem %s1014_s0, %s628_s29  ;;  %762 = vmatprep.subr.bf16.mxu0 %v761_v7  ;;  %766 = vmatprep.subr.bf16.mxu1 %v761_v7  ;;  %s977_s7 = scalar_lea.vmem %s1016_s2, %s628_s29 }
  0x30   : > { %v162_v5 = vld [vmem:[%s906_s4] sm:$0xff]  ;;  %v163_v8 = vld [vmem:[%s906_s4 + $0x8] sm:$0xff]  ;;  %v164_v10 = vld [vmem:[%s906_s4 + $0x10] sm:$0xff] }
  0x31   : > { %v178_v6 = vld [vmem:[%s906_s4 + $0x80] sm:$0xff]  ;;  %709 = vmatprep.mubr.msk.f32.mxu0 %vm198_vm0, %v162_v5  ;;  %v179_v9 = vld [vmem:[%s906_s4 + $0x88] sm:$0xff]  ;;  %v180_v11 = vld [vmem:[%s906_s4 + $0x90] sm:$0xff] }
  0x32   : > { %733 = vmatprep.mubr.msk.f32.mxu1 %vm198_vm0, %v178_v6  ;;  %764 = vmatpush3.bf16.msra.mxu0 %v761_v7  ;;  %v165_v12 = vld [vmem:[%s906_s4 + $0x18] sm:$0xff]  ;;  %v166_v14 = vld [vmem:[%s906_s4 + $0x20] sm:$0xff]  ;;  %v167_v16 = vld [vmem:[%s906_s4 + $0x28] sm:$0xff] }
  0x33   : > { %768 = vmatpush3.bf16.msra.mxu1 %v761_v7  ;;  %v181_v13 = vld [vmem:[%s906_s4 + $0x98] sm:$0xff]  ;;  %v182_v15 = vld [vmem:[%s906_s4 + $0xa0] sm:$0xff]  ;;  %v183_v17 = vld [vmem:[%s906_s4 + $0xa8] sm:$0xff] }
  0x34   : > { %v168_v18 = vld [vmem:[%s906_s4 + $0x30] sm:$0xff]  ;;  %v169_v20 = vld [vmem:[%s906_s4 + $0x38] sm:$0xff]  ;;  %v170_v22 = vld [vmem:[%s906_s4 + $0x40] sm:$0xff] }
  0x35   : > { %710 = vmatmul.mubr.msk.f32.vlgmr.msra.gmra.mrb[0].mxu0 %vm198_vm0, %v163_v8  ;;  %v184_v19 = vld [vmem:[%s906_s4 + $0xb0] sm:$0xff]  ;;  %v185_v21 = vld [vmem:[%s906_s4 + $0xb8] sm:$0xff]  ;;  %v186_v23 = vld [vmem:[%s906_s4 + $0xc0] sm:$0xff] }
  0x36   : > { %734 = vmatmul.mubr.msk.f32.vlgmr.msra.gmra.mrb[0].mxu1 %vm198_vm0, %v179_v9  ;;  %712 = vmatprep.mubr.msk.f32.mxu0 %vm198_vm0, %v164_v10  ;;  %v171_v24 = vld [vmem:[%s906_s4 + $0x48] sm:$0xff]  ;;  %v172_v26 = vld [vmem:[%s906_s4 + $0x50] sm:$0xff]  ;;  %v173_v28 = vld [vmem:[%s906_s4 + $0x58] sm:$0xff] }
  0x37   : > { %736 = vmatprep.mubr.msk.f32.mxu1 %vm198_vm0, %v180_v11  ;;  %v187_v25 = vld [vmem:[%s906_s4 + $0xc8] sm:$0xff]  ;;  %v188_v27 = vld [vmem:[%s906_s4 + $0xd0] sm:$0xff]  ;;  %v189_v29 = vld [vmem:[%s906_s4 + $0xd8] sm:$0xff] }
  0x38   : > { %v174_v30 = vld [vmem:[%s906_s4 + $0x60] sm:$0xff]  ;;  %v175_v32 = vld [vmem:[%s906_s4 + $0x68] sm:$0xff]  ;;  %v176_v34 = vld [vmem:[%s906_s4 + $0x70] sm:$0xff] }
  0x39   : > { %713 = vmatmul.mubr.msk.f32.gmra.mrb[2].mxu0 %vm198_vm0, %v165_v12  ;;  %v190_v31 = vld [vmem:[%s906_s4 + $0xe0] sm:$0xff]  ;;  %v191_v33 = vld [vmem:[%s906_s4 + $0xe8] sm:$0xff]  ;;  %v192_v35 = vld [vmem:[%s906_s4 + $0xf0] sm:$0xff] }
  0x3a   : > { %737 = vmatmul.mubr.msk.f32.gmra.mrb[2].mxu1 %vm198_vm0, %v181_v13  ;;  %715 = vmatprep.mubr.msk.f32.mxu0 %vm198_vm0, %v166_v14  ;;  %v177_v36 = vld [vmem:[%s906_s4 + $0x78] sm:$0xff] }
  0x3b   : > { %739 = vmatprep.mubr.msk.f32.mxu1 %vm198_vm0, %v182_v15  ;;  %v193_v37 = vld [vmem:[%s906_s4 + $0xf8] sm:$0xff] }
  0x3d   : > { %716 = vmatmul.mubr.msk.f32.gmra.mrb[4].mxu0 %vm198_vm0, %v167_v16 }
  0x3e   : > { %740 = vmatmul.mubr.msk.f32.gmra.mrb[4].mxu1 %vm198_vm0, %v183_v17  ;;  %718 = vmatprep.mubr.msk.f32.mxu0 %vm198_vm0, %v168_v18 }
  0x3f   : > { %742 = vmatprep.mubr.msk.f32.mxu1 %vm198_vm0, %v184_v19 }
  0x41   : > { %719 = vmatmul.mubr.msk.f32.gmra.mrb[6].mxu0 %vm198_vm0, %v169_v20 }
  0x42   : > { %743 = vmatmul.mubr.msk.f32.gmra.mrb[6].mxu1 %vm198_vm0, %v185_v21  ;;  %721 = vmatprep.mubr.msk.f32.mxu0 %vm198_vm0, %v170_v22 }
  0x43   : > { %745 = vmatprep.mubr.msk.f32.mxu1 %vm198_vm0, %v186_v23 }
  0x45   : > { %722 = vmatmul.mubr.msk.f32.gmra.mrb[8].mxu0 %vm198_vm0, %v171_v24 }
  0x46   : > { %746 = vmatmul.mubr.msk.f32.gmra.mrb[8].mxu1 %vm198_vm0, %v187_v25  ;;  %724 = vmatprep.mubr.msk.f32.mxu0 %vm198_vm0, %v172_v26 }
  0x47   : > { %748 = vmatprep.mubr.msk.f32.mxu1 %vm198_vm0, %v188_v27 }
  0x49   : > { %725 = vmatmul.mubr.msk.f32.gmra.mrb[10].mxu0 %vm198_vm0, %v173_v28 }
  0x4a   : > { %749 = vmatmul.mubr.msk.f32.gmra.mrb[10].mxu1 %vm198_vm0, %v189_v29  ;;  %727 = vmatprep.mubr.msk.f32.mxu0 %vm198_vm0, %v174_v30 }
  0x4b   : > { %751 = vmatprep.mubr.msk.f32.mxu1 %vm198_vm0, %v190_v31 }
  0x4d   : > { %728 = vmatmul.mubr.msk.f32.gmra.mrb[12].mxu0 %vm198_vm0, %v175_v32 }
  0x4e   : > { %752 = vmatmul.mubr.msk.f32.gmra.mrb[12].mxu1 %vm198_vm0, %v191_v33  ;;  %730 = vmatprep.mubr.msk.f32.mxu0 %vm198_vm0, %v176_v34 }
  0x4f   : > { %754 = vmatprep.mubr.msk.f32.mxu1 %vm198_vm0, %v192_v35 }
  0x51   : > { %731 = vmatmul.mubr.msk.f32.gmra.mrb[14].mxu0 %vm198_vm0, %v177_v36 }
  0x52   : > { %755 = vmatmul.mubr.msk.f32.gmra.mrb[14].mxu1 %vm198_vm0, %v193_v37 }
 0x108   : > { %v711_v38 = vpop.f32.mrb[0].mxu0 }
 0x109   : > { %v735_v39 = vpop.f32.mrb[0].mxu1  ;;  %521 = vst [vmem:[%s977_s7 + $0x8] sm:$0xff] %v711_v38  ;;  %v361_v40 = vpop.f32.mrb[1].mxu0 }
 0x10a   : > { %537 = vst [vmem:[%s977_s7 + $0x88] sm:$0xff] %v735_v39  ;;  %v441_v41 = vpop.f32.mrb[1].mxu1  ;;  %520 = vst [vmem:[%s977_s7] sm:$0xff] %v361_v40 }
 0x10b   : > { %536 = vst [vmem:[%s977_s7 + $0x80] sm:$0xff] %v441_v41 }
 0x10c   : > { %v714_v42 = vpop.f32.mrb[2].mxu0 }
 0x10d   : > { %v738_v43 = vpop.f32.mrb[2].mxu1  ;;  %523 = vst [vmem:[%s977_s7 + $0x18] sm:$0xff] %v714_v42  ;;  %v371_v44 = vpop.f32.mrb[3].mxu0 }
 0x10e   : > { %539 = vst [vmem:[%s977_s7 + $0x98] sm:$0xff] %v738_v43  ;;  %v451_v45 = vpop.f32.mrb[3].mxu1  ;;  %522 = vst [vmem:[%s977_s7 + $0x10] sm:$0xff] %v371_v44 }
 0x10f   : > { %538 = vst [vmem:[%s977_s7 + $0x90] sm:$0xff] %v451_v45 }
 0x110   : > { %v717_v46 = vpop.f32.mrb[4].mxu0 }
 0x111   : > { %v741_v47 = vpop.f32.mrb[4].mxu1  ;;  %525 = vst [vmem:[%s977_s7 + $0x28] sm:$0xff] %v717_v46  ;;  %v381_v48 = vpop.f32.mrb[5].mxu0 }
 0x112   : > { %541 = vst [vmem:[%s977_s7 + $0xa8] sm:$0xff] %v741_v47  ;;  %v461_v49 = vpop.f32.mrb[5].mxu1  ;;  %524 = vst [vmem:[%s977_s7 + $0x20] sm:$0xff] %v381_v48 }
 0x113   : > { %540 = vst [vmem:[%s977_s7 + $0xa0] sm:$0xff] %v461_v49 }
 0x114   : > { %v720_v50 = vpop.f32.mrb[6].mxu0 }
 0x115   : > { %v744_v51 = vpop.f32.mrb[6].mxu1  ;;  %527 = vst [vmem:[%s977_s7 + $0x38] sm:$0xff] %v720_v50  ;;  %v391_v52 = vpop.f32.mrb[7].mxu0 }
 0x116   : > { %543 = vst [vmem:[%s977_s7 + $0xb8] sm:$0xff] %v744_v51  ;;  %v471_v53 = vpop.f32.mrb[7].mxu1  ;;  %526 = vst [vmem:[%s977_s7 + $0x30] sm:$0xff] %v391_v52 }
 0x117   : > { %542 = vst [vmem:[%s977_s7 + $0xb0] sm:$0xff] %v471_v53 }
 0x118   : > { %v723_v54 = vpop.f32.mrb[8].mxu0 }
 0x119   : > { %v747_v55 = vpop.f32.mrb[8].mxu1  ;;  %529 = vst [vmem:[%s977_s7 + $0x48] sm:$0xff] %v723_v54  ;;  %v401_v56 = vpop.f32.mrb[9].mxu0 }
 0x11a   : > { %545 = vst [vmem:[%s977_s7 + $0xc8] sm:$0xff] %v747_v55  ;;  %v481_v57 = vpop.f32.mrb[9].mxu1  ;;  %528 = vst [vmem:[%s977_s7 + $0x40] sm:$0xff] %v401_v56 }
 0x11b   : > { %544 = vst [vmem:[%s977_s7 + $0xc0] sm:$0xff] %v481_v57 }
 0x11c   : > { %v726_v58 = vpop.f32.mrb[10].mxu0 }
 0x11d   : > { %v750_v59 = vpop.f32.mrb[10].mxu1  ;;  %531 = vst [vmem:[%s977_s7 + $0x58] sm:$0xff] %v726_v58  ;;  %v411_v60 = vpop.f32.mrb[11].mxu0 }
 0x11e   : > { %547 = vst [vmem:[%s977_s7 + $0xd8] sm:$0xff] %v750_v59  ;;  %v491_v61 = vpop.f32.mrb[11].mxu1  ;;  %530 = vst [vmem:[%s977_s7 + $0x50] sm:$0xff] %v411_v60 }
 0x11f   : > { %546 = vst [vmem:[%s977_s7 + $0xd0] sm:$0xff] %v491_v61 }
 0x120   : > { %v729_v62 = vpop.f32.mrb[12].mxu0 }
 0x121   : > { %v753_v63 = vpop.f32.mrb[12].mxu1  ;;  %533 = vst [vmem:[%s977_s7 + $0x68] sm:$0xff] %v729_v62  ;;  %v421_v0 = vpop.f32.mrb[13].mxu0 }
 0x122   : > { %549 = vst [vmem:[%s977_s7 + $0xe8] sm:$0xff] %v753_v63  ;;  %v501_v1 = vpop.f32.mrb[13].mxu1  ;;  %532 = vst [vmem:[%s977_s7 + $0x60] sm:$0xff] %v421_v0 }
 0x123   : > { %548 = vst [vmem:[%s977_s7 + $0xe0] sm:$0xff] %v501_v1 }
 0x124   : > { %v732_v2 = vpop.f32.mrb[14].mxu0 }
 0x125   : > { %v756_v3 = vpop.f32.mrb[14].mxu1  ;;  %535 = vst [vmem:[%s977_s7 + $0x78] sm:$0xff] %v732_v2  ;;  %v431_v4 = vpop.f32.mrb[15].mxu0 }
 0x126   : > { %551 = vst [vmem:[%s977_s7 + $0xf8] sm:$0xff] %v756_v3  ;;  %v511_v5 = vpop.f32.mrb[15].mxu1  ;;  %534 = vst [vmem:[%s977_s7 + $0x70] sm:$0xff] %v431_v4 }
 0x127   : > { %550 = vst [vmem:[%s977_s7 + $0xf0] sm:$0xff] %v511_v5 }
 0x128 PF: > { %s13_s9 = sadd.s32 1, %s828_s9  }
 0x129   : > { %p10_p3 = scmp.ge.s32.totalorder %s13_s9, 4  }
 0x12b   :  { %12 = sbr.rel (!%p10_p3) target bundleno = 1 (0x1), region = 63 }
 0x132   :  { %574 = vsyncpa [#allocation3], 1 }
 0x133   :  { %576 = vsyncpa [#allocation3 + $0x1], 1 }

// kernel: two_order_forward.4
= control target key start
LH: loop header
LB: loop body
LE: loop exit
PB: predicated region body
PF: predicated region fallthrough
CT: control target
= control target key end

     0   :  { %s1684_s15 = smov 0   ;;  %s2351_s0 = inlined_call_operand.vmem [shape: f32[512,512], index: 0, kind: input, shape index: {}]   ;;  %s2352_s1 = inlined_call_operand.vmem [shape: f32[512,32], index: 1, kind: input, shape index: {}]   ;;  %s2353_s2 = inlined_call_operand.vmem [shape: f32[512,128], index: 2, kind: input, shape index: {}]   ;;  %s2354_s3 = inlined_call_operand.vmem [shape: f32[32,128], index: 3, kind: input, shape index: {}]   ;;  %s2355_s4 = inlined_call_operand.vmem [shape: f32[512,128], index: 4, kind: output, shape index: {}]  }
   0x1 LB: > { %s1326_s16 = sadd.s32 4294967295, %s1656_s15   ;;  %p1330_p0 = scmp.ge.s32.totalorder %s1656_s15, 1  ;;  %s1656_s15 = sphi %s1684_s15, %s14_s15  }
   0x2   : > { %p175_p1 = scmp.lt.s32.totalorder %s1656_s15, 3 }
   0x4   : > { %p176_p2 = pnand %p1330_p0, %p175_p1 }
   0x5   : > { %v390_v0 = vld [vmem:[%s2353_s2] sm:$0xff] (!%p176_p2)  ;;  %v391_v1 = vld [vmem:[%s2353_s2 + $0x8] sm:$0xff] (!%p176_p2)  ;;  %v1658_v3 = vmov (!%p176_p2), 0.0|0.0   ;;  %v392_v6 = vld [vmem:[%s2353_s2 + $0x10] sm:$0xff] (!%p176_p2)  ;;  %s1331_s11 = sshll.u32 (!%p176_p2), %s1326_s16, 5  ;;  %vm904_vm0 = vcmask (!%p176_p2), 261120  }
   0x6   : > { %179 = sbr.rel (%p176_p2) target bundleno = 444 (0x1bc), region = 36  ;;  %v422_v2 = vld [vmem:[%s2353_s2 + $0x100] sm:$0xff] (!%p176_p2)  ;;  %1465 = vmatprep.subr.bf16.mxu0 (!%p176_p2), %v1658_v3  ;;  %1569 = vmatprep.subr.bf16.mxu1 (!%p176_p2), %v1658_v3  ;;  %v1466_v4 = vpack.c.bf16 (!%p176_p2), %v391_v1, %v390_v0  ;;  %v423_v5 = vld [vmem:[%s2353_s2 + $0x108] sm:$0xff] (!%p176_p2)  ;;  %v393_v7 = vld [vmem:[%s2353_s2 + $0x18] sm:$0xff] (!%p176_p2)  ;;  %p208_p3 = scmp.lt.s32.totalorder (!%p176_p2), %s1331_s11, 63 }
   0x7   : > { %v1712_v8 = vpack.c.bf16 (!%p176_p2), %v423_v5, %v422_v2  ;;  %v424_v9 = vld [vmem:[%s2353_s2 + $0x110] sm:$0xff] (!%p176_p2)  ;;  %v425_v10 = vld [vmem:[%s2353_s2 + $0x118] sm:$0xff] (!%p176_p2)  ;;  %v1469_v11 = vpack.c.bf16 (!%p176_p2), %v393_v7, %v392_v6  ;;  %v394_v13 = vld [vmem:[%s2353_s2 + $0x20] sm:$0xff] (!%p176_p2) }
   0x8   : > { %1467 = vmatpush1.bf16.msra.mxu0 (!%p176_p2), %v1466_v4  ;;  %v1722_v12 = vpack.c.bf16 (!%p176_p2), %v425_v10, %v424_v9  ;;  %v395_v14 = vld [vmem:[%s2353_s2 + $0x28] sm:$0xff] (!%p176_p2)  ;;  %v426_v15 = vld [vmem:[%s2353_s2 + $0x120] sm:$0xff] (!%p176_p2)  ;;  %v396_v19 = vld [vmem:[%s2353_s2 + $0x30] sm:$0xff] (!%p176_p2) }
   0x9   : > { %1585 = vmatpush1.bf16.msra.mxu1 (!%p176_p2), %v1712_v8  ;;  %1468 = vmatprep.subr.bf16.mxu0 (!%p176_p2), %v1658_v3  ;;  %v427_v16 = vld [vmem:[%s2353_s2 + $0x128] sm:$0xff] (!%p176_p2)  ;;  %v1472_v17 = vpack.c.bf16 (!%p176_p2), %v395_v14, %v394_v13  ;;  %v397_v20 = vld [vmem:[%s2353_s2 + $0x38] sm:$0xff] (!%p176_p2)  ;;  %v428_v21 = vld [vmem:[%s2353_s2 + $0x130] sm:$0xff] (!%p176_p2) }
   0xa   : > { %1570 = vmatprep.subr.bf16.mxu1 (!%p176_p2), %v1658_v3  ;;  %v1739_v18 = vpack.c.bf16 (!%p176_p2), %v427_v16, %v426_v15  ;;  %v429_v22 = vld [vmem:[%s2353_s2 + $0x138] sm:$0xff] (!%p176_p2)  ;;  %v1475_v23 = vpack.c.bf16 (!%p176_p2), %v397_v20, %v396_v19  ;;  %v398_v25 = vld [vmem:[%s2353_s2 + $0x40] sm:$0xff] (!%p176_p2)  ;;  %v399_v26 = vld [vmem:[%s2353_s2 + $0x48] sm:$0xff] (!%p176_p2) }
   0xb   : > { %v1758_v24 = vpack.c.bf16 (!%p176_p2), %v429_v22, %v428_v21  ;;  %v430_v27 = vld [vmem:[%s2353_s2 + $0x140] sm:$0xff] (!%p176_p2)  ;;  %v431_v28 = vld [vmem:[%s2353_s2 + $0x148] sm:$0xff] (!%p176_p2)  ;;  %v1478_v29 = vpack.c.bf16 (!%p176_p2), %v399_v26, %v398_v25  ;;  %v400_v31 = vld [vmem:[%s2353_s2 + $0x50] sm:$0xff] (!%p176_p2) }
   0xc   : > { %1470 = vmatpush1.bf16.msra.mxu0 (!%p176_p2), %v1469_v11  ;;  %v1776_v30 = vpack.c.bf16 (!%p176_p2), %v431_v28, %v430_v27  ;;  %v401_v32 = vld [vmem:[%s2353_s2 + $0x58] sm:$0xff] (!%p176_p2)  ;;  %v432_v33 = vld [vmem:[%s2353_s2 + $0x150] sm:$0xff] (!%p176_p2)  ;;  %v402_v37 = vld [vmem:[%s2353_s2 + $0x60] sm:$0xff] (!%p176_p2) }
   0xd   : > { %1586 = vmatpush1.bf16.msra.mxu1 %v1722_v12  ;;  %1471 = vmatprep.subr.bf16.mxu0 %v1658_v3  ;;  %s2357_s11 = smov (!%p208_p3, %s1331_s11), 63  ;;  %v433_v34 = vld [vmem:[%s2353_s2 + $0x158] sm:$0xff]  ;;  %v1481_v35 = vpack.c.bf16 %v401_v32, %v400_v31  ;;  %v403_v38 = vld [vmem:[%s2353_s2 + $0x68] sm:$0xff]  ;;  %v434_v39 = vld [vmem:[%s2353_s2 + $0x160] sm:$0xff] }
   0xe   : > { %1571 = vmatprep.subr.bf16.mxu1 %v1658_v3  ;;  %s1372_s7 = sshll.u32 %s2357_s11, 5  ;;  %v1798_v36 = vpack.c.bf16 %v433_v34, %v432_v33  ;;  %v435_v40 = vld [vmem:[%s2353_s2 + $0x168] sm:$0xff]  ;;  %v1484_v43 = vpack.c.bf16 %v403_v38, %v402_v37  ;;  %v404_v45 = vld [vmem:[%s2353_s2 + $0x70] sm:$0xff]  ;;  %v405_v46 = vld [vmem:[%s2353_s2 + $0x78] sm:$0xff]  ;;  %s1335_s17 = sshll.u32 %s2357_s11, 3 }
   0xf   : > { %s1794_s20 = scalar_lea.vmem %s2351_s0, %s1372_s7  ;;  %v1817_v44 = vpack.c.bf16 %v435_v40, %v434_v39  ;;  %v436_v47 = vld [vmem:[%s2353_s2 + $0x170] sm:$0xff]  ;;  %v437_v48 = vld [vmem:[%s2353_s2 + $0x178] sm:$0xff]  ;;  %v1487_v49 = vpack.c.bf16 %v405_v46, %v404_v45  ;;  %v406_v51 = vld [vmem:[%s2353_s2 + $0x80] sm:$0xff]  ;;  %s2116_s19 = scalar_lea.vmem %s2352_s1, %s1335_s17 }
  0x10   : > { %1473 = vmatpush1.bf16.msra.mxu0 %v1472_v17  ;;  %v263_v41 = vld [vmem:[%s1794_s20 + $0x8] sm:$0xff]  ;;  %v297_v42 = vld [vmem:[%s1794_s20 + $0x118] sm:$0xff]  ;;  %v1834_v50 = vpack.c.bf16 %v437_v48, %v436_v47  ;;  %v438_v53 = vld [vmem:[%s2353_s2 + $0x180] sm:$0xff]  ;;  %s2277_s22 = scalar_lea.vmem %s2355_s4, %s1335_s17 }
  0x11   : > { %1587 = vmatpush1.bf16.msra.mxu1 %v1739_v18  ;;  %1474 = vmatprep.subr.bf16.mxu0 %v1658_v3  ;;  %v407_v52 = vld [vmem:[%s2353_s2 + $0x88] sm:$0xff]  ;;  %v408_v57 = vld [vmem:[%s2353_s2 + $0x90] sm:$0xff]  ;;  %v409_v58 = vld [vmem:[%s2353_s2 + $0x98] sm:$0xff] }
  0x12   : > { %1572 = vmatprep.subr.bf16.mxu1 %v1658_v3  ;;  %518 = vmatprep.mubr.f32.mxu0 %v263_v41  ;;  %v439_v54 = vld [vmem:[%s2353_s2 + $0x188] sm:$0xff]  ;;  %v1490_v55 = vpack.c.bf16 %v407_v52, %v406_v51  ;;  %v440_v59 = vld [vmem:[%s2353_s2 + $0x190] sm:$0xff]  ;;  %v441_v60 = vld [vmem:[%s2353_s2 + $0x198] sm:$0xff]  ;;  %v1493_v61 = vpack.c.bf16 %v409_v58, %v408_v57 }
  0x13   : > { %783 = vmatprep.mubr.f32.mxu1 %v297_v42  ;;  %v1851_v56 = vpack.c.bf16 %v439_v54, %v438_v53  ;;  %v1868_v62 = vpack.c.bf16 %v441_v60, %v440_v59  ;;  %v410_v63 = vld [vmem:[%s2353_s2 + $0xa0] sm:$0xff]  ;;  %v411_v0 = vld [vmem:[%s2353_s2 + $0xa8] sm:$0xff]  ;;  %v412_v6 = vld [vmem:[%s2353_s2 + $0xb0] sm:$0xff] }
  0x14   : > { %1476 = vmatpush1.bf16.msra.mxu0 %v1475_v23  ;;  %v442_v1 = vld [vmem:[%s2353_s2 + $0x1a0] sm:$0xff]  ;;  %v443_v2 = vld [vmem:[%s2353_s2 + $0x1a8] sm:$0xff]  ;;  %v1496_v4 = vpack.c.bf16 %v411_v0, %v410_v63  ;;  %v413_v7 = vld [vmem:[%s2353_s2 + $0xb8] sm:$0xff] }
  0x15   : > { %1588 = vmatpush1.bf16.msra.mxu1 %v1758_v24  ;;  %1477 = vmatprep.subr.bf16.mxu0 %v1658_v3  ;;  %v1885_v5 = vpack.c.bf16 %v443_v2, %v442_v1  ;;  %v444_v9 = vld [vmem:[%s2353_s2 + $0x1b0] sm:$0xff]  ;;  %v445_v10 = vld [vmem:[%s2353_s2 + $0x1b8] sm:$0xff]  ;;  %v1499_v11 = vpack.c.bf16 %v413_v7, %v412_v6  ;;  %v414_v14 = vld [vmem:[%s2353_s2 + $0xc0] sm:$0xff] }
  0x16   : > { %1573 = vmatprep.subr.bf16.mxu1 %v1658_v3  ;;  %v1902_v13 = vpack.c.bf16 %v445_v10, %v444_v9  ;;  %v415_v15 = vld [vmem:[%s2353_s2 + $0xc8] sm:$0xff]  ;;  %v446_v16 = vld [vmem:[%s2353_s2 + $0x1c0] sm:$0xff]  ;;  %v416_v21 = vld [vmem:[%s2353_s2 + $0xd0] sm:$0xff] }
  0x17   : > { %v447_v17 = vld [vmem:[%s2353_s2 + $0x1c8] sm:$0xff]  ;;  %v1502_v19 = vpack.c.bf16 %v415_v15, %v414_v14  ;;  %v417_v22 = vld [vmem:[%s2353_s2 + $0xd8] sm:$0xff]  ;;  %v448_v23 = vld [vmem:[%s2353_s2 + $0x1d0] sm:$0xff] }
  0x18   : > { %1479 = vmatpush1.bf16.msra.mxu0 %v1478_v29  ;;  %v1919_v20 = vpack.c.bf16 %v447_v17, %v446_v16  ;;  %v449_v25 = vld [vmem:[%s2353_s2 + $0x1d8] sm:$0xff]  ;;  %v1505_v26 = vpack.c.bf16 %v417_v22, %v416_v21  ;;  %v418_v28 = vld [vmem:[%s2353_s2 + $0xe0] sm:$0xff]  ;;  %v419_v29 = vld [vmem:[%s2353_s2 + $0xe8] sm:$0xff] }
  0x19   : > { %1589 = vmatpush1.bf16.msra.mxu1 %v1776_v30  ;;  %1480 = vmatprep.subr.bf16.mxu0 %v1658_v3  ;;  %v1936_v27 = vpack.c.bf16 %v449_v25, %v448_v23  ;;  %v450_v31 = vld [vmem:[%s2353_s2 + $0x1e0] sm:$0xff]  ;;  %v451_v32 = vld [vmem:[%s2353_s2 + $0x1e8] sm:$0xff]  ;;  %v1508_v33 = vpack.c.bf16 %v419_v29, %v418_v28  ;;  %v421_v37 = vld [vmem:[%s2353_s2 + $0xf8] sm:$0xff] }
  0x1a   : > { %1574 = vmatprep.subr.bf16.mxu1 %v1658_v3  ;;  %v1953_v34 = vpack.c.bf16 %v451_v32, %v450_v31  ;;  %v452_v38 = vld [vmem:[%s2353_s2 + $0x1f0] sm:$0xff]  ;;  %v453_v39 = vld [vmem:[%s2353_s2 + $0x1f8] sm:$0xff]  ;;  %v258_v40 = vld [vmem:[%s2354_s3] sm:$0xff] }
  0x1b   : > { %v259_v41 = vld [vmem:[%s2354_s3 + $0x8] sm:$0xff]  ;;  %v262_v46 = vld [vmem:[%s1794_s20] sm:$0xff]  ;;  %v260_v47 = vld [vmem:[%s2354_s3 + $0x10] sm:$0xff] }
  0x1c   : > { %1482 = vmatpush1.bf16.msra.mxu0 %v1481_v35  ;;  %v420_v35 = vld [vmem:[%s2353_s2 + $0xf0] sm:$0xff]  ;;  %v1561_v45 = vpack.c.bf16 %v259_v41, %v258_v40  ;;  %v261_v48 = vld [vmem:[%s2354_s3 + $0x18] sm:$0xff]  ;;  %v267_v51 = vld [vmem:[%s1794_s20 + $0x28] sm:$0xff] }
  0x1d   : > { %1590 = vmatpush1.bf16.msra.mxu1 %v1798_v36  ;;  %1483 = vmatprep.subr.bf16.mxu0 %v1658_v3  ;;  %v1511_v42 = vpack.c.bf16 %v421_v37, %v420_v35  ;;  %v301_v52 = vld [vmem:[%s1794_s20 + $0x138] sm:$0xff]  ;;  %v1565_v53 = vpack.c.bf16 %v261_v48, %v260_v47  ;;  %v266_v54 = vld [vmem:[%s1794_s20 + $0x20] sm:$0xff]  ;;  %v271_v57 = vld [vmem:[%s1794_s20 + $0x48] sm:$0xff] }
  0x1e   : > { %1575 = vmatprep.subr.bf16.mxu1 %v1658_v3  ;;  %v305_v58 = vld [vmem:[%s1794_s20 + $0x158] sm:$0xff]  ;;  %v270_v59 = vld [vmem:[%s1794_s20 + $0x40] sm:$0xff]  ;;  %v275_v60 = vld [vmem:[%s1794_s20 + $0x68] sm:$0xff] }
  0x1f   : > { %v274_v63 = vld [vmem:[%s1794_s20 + $0x60] sm:$0xff]  ;;  %v308_v0 = vld [vmem:[%s1794_s20 + $0x170] sm:$0xff]  ;;  %v279_v1 = vld [vmem:[%s1794_s20 + $0x88] sm:$0xff] }
  0x20   : > { %1485 = vmatpush1.bf16.msra.mxu0 %v1484_v43  ;;  %v1976_v43 = vpack.c.bf16 %v453_v39, %v452_v38  ;;  %v278_v2 = vld [vmem:[%s1794_s20 + $0x80] sm:$0xff]  ;;  %v283_v6 = vld [vmem:[%s1794_s20 + $0xa8] sm:$0xff]  ;;  %v317_v7 = vld [vmem:[%s1794_s20 + $0x1b8] sm:$0xff] }
  0x21   : > { %1591 = vmatpush1.bf16.msra.mxu1 %v1817_v44  ;;  %1486 = vmatprep.subr.bf16.mxu0 %v1658_v3  ;;  %v316_v9 = vld [vmem:[%s1794_s20 + $0x1b0] sm:$0xff]  ;;  %v287_v10 = vld [vmem:[%s1794_s20 + $0xc8] sm:$0xff]  ;;  %v325_v16 = vld [vmem:[%s1794_s20 + $0x1f8] sm:$0xff] }
  0x22   : > { %1576 = vmatprep.subr.bf16.mxu1 %v1658_v3  ;;  %v320_v14 = vld [vmem:[%s1794_s20 + $0x1d0] sm:$0xff]  ;;  %v291_v15 = vld [vmem:[%s1794_s20 + $0xe8] sm:$0xff]  ;;  %v329_v21 = vld [vmem:[%s1794_s20 + $0x218] sm:$0xff] }
  0x23   : > { %v324_v17 = vld [vmem:[%s1794_s20 + $0x1f0] sm:$0xff]  ;;  %v299_v23 = vld [vmem:[%s1794_s20 + $0x128] sm:$0xff]  ;;  %v333_v25 = vld [vmem:[%s1794_s20 + $0x238] sm:$0xff] }
  0x24   : > { %1488 = vmatpush1.bf16.msra.mxu0 %v1487_v49  ;;  %v296_v49 = vld [vmem:[%s1794_s20 + $0x110] sm:$0xff]  ;;  %v303_v28 = vld [vmem:[%s1794_s20 + $0x148] sm:$0xff]  ;;  %v337_v29 = vld [vmem:[%s1794_s20 + $0x258] sm:$0xff] }
  0x25   : > { %1592 = vmatpush1.bf16.msra.mxu1 %v1834_v50  ;;  %1489 = vmatprep.subr.bf16.mxu0 %v1658_v3  ;;  %v328_v22 = vld [vmem:[%s1794_s20 + $0x210] sm:$0xff]  ;;  %v307_v32 = vld [vmem:[%s1794_s20 + $0x168] sm:$0xff]  ;;  %v345_v38 = vld [vmem:[%s1794_s20 + $0x298] sm:$0xff] }
  0x26   : > { %1577 = vmatprep.subr.bf16.mxu1 %v1658_v3  ;;  %v336_v31 = vld [vmem:[%s1794_s20 + $0x250] sm:$0xff]  ;;  %v311_v37 = vld [vmem:[%s1794_s20 + $0x188] sm:$0xff]  ;;  %v349_v41 = vld [vmem:[%s1794_s20 + $0x2b8] sm:$0xff] }
  0x27   : > { %v340_v35 = vld [vmem:[%s1794_s20 + $0x270] sm:$0xff]  ;;  %v315_v40 = vld [vmem:[%s1794_s20 + $0x1a8] sm:$0xff] }
  0x28   : > { %1491 = vmatpush1.bf16.msra.mxu0 %v1490_v55  ;;  %v300_v55 = vld [vmem:[%s1794_s20 + $0x130] sm:$0xff]  ;;  %v323_v48 = vld [vmem:[%s1794_s20 + $0x1e8] sm:$0xff] }
  0x29   : > { %1593 = vmatpush1.bf16.msra.mxu1 %v1851_v56  ;;  %1492 = vmatprep.subr.bf16.mxu0 %v1658_v3  ;;  %v344_v39 = vld [vmem:[%s1794_s20 + $0x290] sm:$0xff] }
  0x2a   : > { %1578 = vmatprep.subr.bf16.mxu1 %v1658_v3  ;;  %v352_v47 = vld [vmem:[%s1794_s20 + $0x2d0] sm:$0xff] }
  0x2c   : > { %1494 = vmatpush1.bf16.msra.mxu0 %v1493_v61  ;;  %v309_v61 = vld [vmem:[%s1794_s20 + $0x178] sm:$0xff] }
  0x2d   : > { %1594 = vmatpush1.bf16.msra.mxu1 %v1868_v62  ;;  %1495 = vmatprep.subr.bf16.mxu0 %v1658_v3 }
  0x2e   : > { %1579 = vmatprep.subr.bf16.mxu1 %v1658_v3 }
  0x30   : > { %1497 = vmatpush1.bf16.msra.mxu0 %v1496_v4  ;;  %v312_v4 = vld [vmem:[%s1794_s20 + $0x190] sm:$0xff] }
  0x31   : > { %1595 = vmatpush1.bf16.msra.mxu1 %v1885_v5  ;;  %1498 = vmatprep.subr.bf16.mxu0 %v1658_v3 }
  0x32   : > { %1580 = vmatprep.subr.bf16.mxu1 %v1658_v3 }
  0x34   : > { %1500 = vmatpush1.bf16.msra.mxu0 %v1499_v11  ;;  %v321_v11 = vld [vmem:[%s1794_s20 + $0x1d8] sm:$0xff] }
  0x35   : > { %1596 = vmatpush1.bf16.msra.mxu1 %v1902_v13  ;;  %1501 = vmatprep.subr.bf16.mxu0 %v1658_v3 }
  0x36   : > { %1581 = vmatprep.subr.bf16.mxu1 %v1658_v3 }
  0x38   : > { %1503 = vmatpush1.bf16.msra.mxu0 %v1502_v19  ;;  %v295_v19 = vld [vmem:[%s1794_s20 + $0x108] sm:$0xff] }
  0x39   : > { %1597 = vmatpush1.bf16.msra.mxu1 %v1919_v20  ;;  %1504 = vmatprep.subr.bf16.mxu0 %v1658_v3 }
  0x3a   : > { %1582 = vmatprep.subr.bf16.mxu1 %v1658_v3 }
  0x3c   : > { %1506 = vmatpush1.bf16.msra.mxu0 %v1505_v26  ;;  %v332_v26 = vld [vmem:[%s1794_s20 + $0x230] sm:$0xff] }
  0x3d   : > { %1598 = vmatpush1.bf16.msra.mxu1 %v1936_v27  ;;  %1507 = vmatprep.subr.bf16.mxu0 %v1658_v3 }
  0x3e   : > { %1583 = vmatprep.subr.bf16.mxu1 %v1658_v3 }
  0x40   : > { %1509 = vmatpush1.bf16.msra.mxu0 %v1508_v33  ;;  %v341_v33 = vld [vmem:[%s1794_s20 + $0x278] sm:$0xff] }
  0x41   : > { %1599 = vmatpush1.bf16.msra.mxu1 %v1953_v34  ;;  %1510 = vmatprep.subr.bf16.mxu0 %v1658_v3 }
  0x42   : > { %1584 = vmatprep.subr.bf16.mxu1 %v1658_v3 }
  0x44   : > { %1512 = vmatpush1.bf16.msra.mxu0 %v1511_v42  ;;  %v348_v42 = vld [vmem:[%s1794_s20 + $0x2b0] sm:$0xff] }
  0x45   : > { %1600 = vmatpush1.bf16.msra.mxu1 %v1976_v43  ;;  %1513 = vmatprep.subr.bf16.mxu0 %v1658_v3 }
  0x46   : > { %1562 = vmatprep.subr.bf16.mxu1 %v1561_v45 }
  0x47   : > { %519 = vmatmul.mubr.f32.vlgmr.msra.gmra.mrb[0].mxu0 %v262_v46  ;;  %v353_v46 = vld [vmem:[%s1794_s20 + $0x2d8] sm:$0xff] }
  0x48   : > { %784 = vmatmul.mubr.f32.vlgmr.msra.gmra.mrb[0].mxu1 %v296_v49  ;;  %1515 = vmatpush1.bf16.msra.mxu0 %v1712_v8  ;;  %v304_v8 = vld [vmem:[%s1794_s20 + $0x150] sm:$0xff]  ;;  %v357_v49 = vld [vmem:[%s1794_s20 + $0x2f8] sm:$0xff] }
  0x49   : > { %1564 = vmatpush3.bf16.msra.mxu1 %v1561_v45  ;;  %523 = vmatprep.mubr.f32.mxu0 %v267_v51  ;;  %v319_v45 = vld [vmem:[%s1794_s20 + $0x1c8] sm:$0xff]  ;;  %v356_v51 = vld [vmem:[%s1794_s20 + $0x2f0] sm:$0xff] }
  0x4a   : > { %788 = vmatprep.mubr.f32.mxu1 %v301_v52  ;;  %1516 = vmatprep.subr.bf16.mxu0 %v1658_v3  ;;  %v327_v52 = vld [vmem:[%s1794_s20 + $0x208] sm:$0xff] }
  0x4b   : > { %524 = vmatmul.mubr.f32.gmra.mrb[2].mxu0 %v266_v54  ;;  %1566 = vmatprep.subr.bf16.mxu1 %v1565_v53  ;;  %v360_v54 = vld [vmem:[%s1794_s20 + $0x310] sm:$0xff] }
  0x4c   : > { %789 = vmatmul.mubr.f32.gmra.mrb[2].mxu1 %v300_v55  ;;  %528 = vmatprep.mubr.f32.mxu0 %v271_v57  ;;  %v331_v55 = vld [vmem:[%s1794_s20 + $0x228] sm:$0xff]  ;;  %v365_v57 = vld [vmem:[%s1794_s20 + $0x338] sm:$0xff] }
  0x4d   : > { %793 = vmatprep.mubr.f32.mxu1 %v305_v58  ;;  %1518 = vmatpush1.bf16.msra.mxu0 %v1722_v12  ;;  %v313_v12 = vld [vmem:[%s1794_s20 + $0x198] sm:$0xff]  ;;  %v335_v58 = vld [vmem:[%s1794_s20 + $0x248] sm:$0xff] }
  0x4e   : > { %1519 = vmatprep.subr.bf16.mxu0 %v1658_v3  ;;  %1568 = vmatpush3.bf16.msra.mxu1 %v1565_v53  ;;  %v361_v53 = vld [vmem:[%s1794_s20 + $0x318] sm:$0xff] }
  0x4f   : > { %529 = vmatmul.mubr.f32.gmra.mrb[4].mxu0 %v270_v59  ;;  %v369_v59 = vld [vmem:[%s1794_s20 + $0x358] sm:$0xff] }
  0x50   : > { %794 = vmatmul.mubr.f32.gmra.mrb[4].mxu1 %v304_v8  ;;  %533 = vmatprep.mubr.f32.mxu0 %v275_v60  ;;  %v334_v8 = vld [vmem:[%s1794_s20 + $0x240] sm:$0xff]  ;;  %v339_v60 = vld [vmem:[%s1794_s20 + $0x268] sm:$0xff] }
  0x51   : > { %798 = vmatprep.mubr.f32.mxu1 %v309_v61  ;;  %1521 = vmatpush1.bf16.msra.mxu0 %v1739_v18  ;;  %v282_v18 = vld [vmem:[%s1794_s20 + $0xa0] sm:$0xff]  ;;  %v373_v61 = vld [vmem:[%s1794_s20 + $0x378] sm:$0xff] }
  0x52   : > { %1522 = vmatprep.subr.bf16.mxu0 %v1658_v3 }
  0x53   : > { %534 = vmatmul.mubr.f32.gmra.mrb[6].mxu0 %v274_v63  ;;  %v338_v63 = vld [vmem:[%s1794_s20 + $0x260] sm:$0xff] }
  0x54   : > { %799 = vmatmul.mubr.f32.gmra.mrb[6].mxu1 %v308_v0  ;;  %538 = vmatprep.mubr.f32.mxu0 %v279_v1  ;;  %v372_v0 = vld [vmem:[%s1794_s20 + $0x370] sm:$0xff]  ;;  %v343_v1 = vld [vmem:[%s1794_s20 + $0x288] sm:$0xff] }
  0x55   : > { %803 = vmatprep.mubr.f32.mxu1 %v313_v12  ;;  %1524 = vmatpush1.bf16.msra.mxu0 %v1758_v24  ;;  %v286_v24 = vld [vmem:[%s1794_s20 + $0xc0] sm:$0xff]  ;;  %v377_v12 = vld [vmem:[%s1794_s20 + $0x398] sm:$0xff] }
  0x56   : > { %1525 = vmatprep.subr.bf16.mxu0 %v1658_v3 }
  0x57   : > { %539 = vmatmul.mubr.f32.gmra.mrb[8].mxu0 %v278_v2  ;;  %v342_v2 = vld [vmem:[%s1794_s20 + $0x280] sm:$0xff] }
  0x58   : > { %804 = vmatmul.mubr.f32.gmra.mrb[8].mxu1 %v312_v4  ;;  %543 = vmatprep.mubr.f32.mxu0 %v283_v6  ;;  %v376_v4 = vld [vmem:[%s1794_s20 + $0x390] sm:$0xff]  ;;  %v347_v6 = vld [vmem:[%s1794_s20 + $0x2a8] sm:$0xff] }
  0x59   : > { %808 = vmatprep.mubr.f32.mxu1 %v317_v7  ;;  %1527 = vmatpush1.bf16.msra.mxu0 %v1776_v30  ;;  %v290_v30 = vld [vmem:[%s1794_s20 + $0xe0] sm:$0xff]  ;;  %v381_v7 = vld [vmem:[%s1794_s20 + $0x3b8] sm:$0xff] }
  0x5a   : > { %1528 = vmatprep.subr.bf16.mxu0 %v1658_v3 }
  0x5b   : > { %544 = vmatmul.mubr.f32.gmra.mrb[10].mxu0 %v282_v18  ;;  %v346_v18 = vld [vmem:[%s1794_s20 + $0x2a0] sm:$0xff] }
  0x5c   : > { %809 = vmatmul.mubr.f32.gmra.mrb[10].mxu1 %v316_v9  ;;  %548 = vmatprep.mubr.f32.mxu0 %v287_v10  ;;  %v380_v9 = vld [vmem:[%s1794_s20 + $0x3b0] sm:$0xff]  ;;  %v351_v10 = vld [vmem:[%s1794_s20 + $0x2c8] sm:$0xff] }
  0x5d   : > { %813 = vmatprep.mubr.f32.mxu1 %v321_v11  ;;  %1530 = vmatpush1.bf16.msra.mxu0 %v1798_v36  ;;  %v294_v36 = vld [vmem:[%s1794_s20 + $0x100] sm:$0xff]  ;;  %v385_v11 = vld [vmem:[%s1794_s20 + $0x3d8] sm:$0xff] }
  0x5e   : > { %1531 = vmatprep.subr.bf16.mxu0 %v1658_v3 }
  0x5f   : > { %549 = vmatmul.mubr.f32.gmra.mrb[12].mxu0 %v286_v24  ;;  %v350_v24 = vld [vmem:[%s1794_s20 + $0x2c0] sm:$0xff] }
  0x60   : > { %814 = vmatmul.mubr.f32.gmra.mrb[12].mxu1 %v320_v14  ;;  %553 = vmatprep.mubr.f32.mxu0 %v291_v15  ;;  %v384_v14 = vld [vmem:[%s1794_s20 + $0x3d0] sm:$0xff]  ;;  %v355_v15 = vld [vmem:[%s1794_s20 + $0x2e8] sm:$0xff] }
  0x61   : > { %818 = vmatprep.mubr.f32.mxu1 %v325_v16  ;;  %1533 = vmatpush1.bf16.msra.mxu0 %v1817_v44  ;;  %v298_v44 = vld [vmem:[%s1794_s20 + $0x120] sm:$0xff]  ;;  %v389_v16 = vld [vmem:[%s1794_s20 + $0x3f8] sm:$0xff] }
  0x62   : > { %1534 = vmatprep.subr.bf16.mxu0 %v1658_v3 }
  0x63   : > { %554 = vmatmul.mubr.f32.gmra.mrb[14].mxu0 %v290_v30  ;;  %v354_v30 = vld [vmem:[%s1794_s20 + $0x2e0] sm:$0xff] }
  0x64   : > { %819 = vmatmul.mubr.f32.gmra.mrb[14].mxu1 %v324_v17  ;;  %558 = vmatprep.mubr.f32.mxu0 %v295_v19  ;;  %v388_v17 = vld [vmem:[%s1794_s20 + $0x3f0] sm:$0xff]  ;;  %v359_v19 = vld [vmem:[%s1794_s20 + $0x308] sm:$0xff] }
  0x65   : > { %823 = vmatprep.mubr.f32.mxu1 %v329_v21  ;;  %1536 = vmatpush1.bf16.msra.mxu0 %v1834_v50  ;;  %v302_v50 = vld [vmem:[%s1794_s20 + $0x140] sm:$0xff] }
  0x66   : > { %1537 = vmatprep.subr.bf16.mxu0 %v1658_v3  ;;  %v226_v21 = vld [vmem:[%s2116_s19] sm:$0xff] }
  0x67   : > { %559 = vmatmul.mubr.f32.gmra.mrb[16].mxu0 %v294_v36  ;;  %v358_v36 = vld [vmem:[%s1794_s20 + $0x300] sm:$0xff] }
  0x68   : > { %824 = vmatmul.mubr.f32.gmra.mrb[16].mxu1 %v328_v22  ;;  %563 = vmatprep.mubr.f32.mxu0 %v299_v23  ;;  %v227_v22 = vld [vmem:[%s2116_s19 + $0x8] sm:$0xff] }
  0x69   : > { %828 = vmatprep.mubr.f32.mxu1 %v333_v25  ;;  %1539 = vmatpush1.bf16.msra.mxu0 %v1851_v56  ;;  %v306_v56 = vld [vmem:[%s1794_s20 + $0x160] sm:$0xff]  ;;  %v363_v23 = vld [vmem:[%s1794_s20 + $0x328] sm:$0xff]  ;;  %v228_v25 = vld [vmem:[%s2116_s19 + $0x10] sm:$0xff] }
  0x6a   : > { %1540 = vmatprep.subr.bf16.mxu0 %v1658_v3 }
  0x6b   : > { %564 = vmatmul.mubr.f32.gmra.mrb[18].mxu0 %v298_v44  ;;  %v362_v44 = vld [vmem:[%s1794_s20 + $0x320] sm:$0xff] }
  0x6c   : > { %829 = vmatmul.mubr.f32.gmra.mrb[18].mxu1 %v332_v26  ;;  %568 = vmatprep.mubr.f32.mxu0 %v303_v28  ;;  %v229_v26 = vld [vmem:[%s2116_s19 + $0x18] sm:$0xff]  ;;  %v367_v28 = vld [vmem:[%s1794_s20 + $0x348] sm:$0xff] }
  0x6d   : > { %833 = vmatprep.mubr.f32.mxu1 %v337_v29  ;;  %1542 = vmatpush1.bf16.msra.mxu0 %v1868_v62  ;;  %v310_v62 = vld [vmem:[%s1794_s20 + $0x180] sm:$0xff] }
  0x6e   : > { %1543 = vmatprep.subr.bf16.mxu0 %v1658_v3  ;;  %v230_v29 = vld [vmem:[%s2116_s19 + $0x20] sm:$0xff] }
  0x6f   : > { %569 = vmatmul.mubr.f32.gmra.mrb[20].mxu0 %v302_v50  ;;  %v366_v50 = vld [vmem:[%s1794_s20 + $0x340] sm:$0xff] }
  0x70   : > { %834 = vmatmul.mubr.f32.gmra.mrb[20].mxu1 %v336_v31  ;;  %573 = vmatprep.mubr.f32.mxu0 %v307_v32  ;;  %v231_v31 = vld [vmem:[%s2116_s19 + $0x28] sm:$0xff] }
  0x71   : > { %838 = vmatprep.mubr.f32.mxu1 %v341_v33  ;;  %1545 = vmatpush1.bf16.msra.mxu0 %v1885_v5  ;;  %v314_v5 = vld [vmem:[%s1794_s20 + $0x1a0] sm:$0xff]  ;;  %v371_v32 = vld [vmem:[%s1794_s20 + $0x368] sm:$0xff]  ;;  %v232_v33 = vld [vmem:[%s2116_s19 + $0x30] sm:$0xff] }
  0x72   : > { %1546 = vmatprep.subr.bf16.mxu0 %v1658_v3 }
  0x73   : > { %574 = vmatmul.mubr.f32.gmra.mrb[22].mxu0 %v306_v56  ;;  %v370_v56 = vld [vmem:[%s1794_s20 + $0x360] sm:$0xff] }
  0x74   : > { %839 = vmatmul.mubr.f32.gmra.mrb[22].mxu1 %v340_v35  ;;  %578 = vmatprep.mubr.f32.mxu0 %v311_v37  ;;  %v233_v35 = vld [vmem:[%s2116_s19 + $0x38] sm:$0xff]  ;;  %v375_v37 = vld [vmem:[%s1794_s20 + $0x388] sm:$0xff] }
  0x75   : > { %843 = vmatprep.mubr.f32.mxu1 %v345_v38  ;;  %1548 = vmatpush1.bf16.msra.mxu0 %v1902_v13  ;;  %v318_v13 = vld [vmem:[%s1794_s20 + $0x1c0] sm:$0xff] }
  0x76   : > { %1549 = vmatprep.subr.bf16.mxu0 %v1658_v3  ;;  %v234_v38 = vld [vmem:[%s2116_s19 + $0x40] sm:$0xff] }
  0x77   : > { %579 = vmatmul.mubr.f32.gmra.mrb[24].mxu0 %v310_v62  ;;  %v374_v62 = vld [vmem:[%s1794_s20 + $0x380] sm:$0xff] }
  0x78   : > { %844 = vmatmul.mubr.f32.gmra.mrb[24].mxu1 %v344_v39  ;;  %583 = vmatprep.mubr.f32.mxu0 %v315_v40  ;;  %v235_v39 = vld [vmem:[%s2116_s19 + $0x48] sm:$0xff] }
  0x79   : > { %848 = vmatprep.mubr.f32.mxu1 %v349_v41  ;;  %1551 = vmatpush1.bf16.msra.mxu0 %v1919_v20  ;;  %v322_v20 = vld [vmem:[%s1794_s20 + $0x1e0] sm:$0xff]  ;;  %v379_v40 = vld [vmem:[%s1794_s20 + $0x3a8] sm:$0xff]  ;;  %v236_v41 = vld [vmem:[%s2116_s19 + $0x50] sm:$0xff] }
  0x7a   : > { %1552 = vmatprep.subr.bf16.mxu0 %v1658_v3 }
  0x7b   : > { %584 = vmatmul.mubr.f32.gmra.mrb[26].mxu0 %v314_v5  ;;  %v378_v5 = vld [vmem:[%s1794_s20 + $0x3a0] sm:$0xff] }
  0x7c   : > { %849 = vmatmul.mubr.f32.gmra.mrb[26].mxu1 %v348_v42  ;;  %588 = vmatprep.mubr.f32.mxu0 %v319_v45  ;;  %v237_v42 = vld [vmem:[%s2116_s19 + $0x58] sm:$0xff]  ;;  %v383_v45 = vld [vmem:[%s1794_s20 + $0x3c8] sm:$0xff] }
  0x7d   : > { %853 = vmatprep.mubr.f32.mxu1 %v353_v46  ;;  %1554 = vmatpush1.bf16.msra.mxu0 %v1936_v27  ;;  %v326_v27 = vld [vmem:[%s1794_s20 + $0x200] sm:$0xff] }
  0x7e   : > { %1555 = vmatprep.subr.bf16.mxu0 %v1658_v3  ;;  %v238_v46 = vld [vmem:[%s2116_s19 + $0x60] sm:$0xff] }
  0x7f   : > { %589 = vmatmul.mubr.f32.gmra.mrb[28].mxu0 %v318_v13  ;;  %v382_v13 = vld [vmem:[%s1794_s20 + $0x3c0] sm:$0xff] }
  0x80   : > { %854 = vmatmul.mubr.f32.gmra.mrb[28].mxu1 %v352_v47  ;;  %593 = vmatprep.mubr.f32.mxu0 %v323_v48  ;;  %v239_v47 = vld [vmem:[%s2116_s19 + $0x68] sm:$0xff] }
  0x81   : > { %858 = vmatprep.mubr.f32.mxu1 %v357_v49  ;;  %1557 = vmatpush1.bf16.msra.mxu0 %v1953_v34  ;;  %v364_v34 = vld [vmem:[%s1794_s20 + $0x330] sm:$0xff]  ;;  %v387_v48 = vld [vmem:[%s1794_s20 + $0x3e8] sm:$0xff] }
  0x82   : > { %1558 = vmatprep.subr.bf16.mxu0 %v1658_v3  ;;  %v330_v3 = vld [vmem:[%s1794_s20 + $0x220] sm:$0xff]  ;;  %v240_v49 = vld [vmem:[%s2116_s19 + $0x70] sm:$0xff] }
  0x83   : > { %594 = vmatmul.mubr.f32.gmra.mrb[30].mxu0 %v322_v20  ;;  %v386_v20 = vld [vmem:[%s1794_s20 + $0x3e0] sm:$0xff] }
  0x84   : > { %859 = vmatmul.mubr.f32.gmra.mrb[30].mxu1 %v356_v51  ;;  %598 = vmatprep.mubr.f32.mxu0 %v327_v52  ;;  %v241_v51 = vld [vmem:[%s2116_s19 + $0x78] sm:$0xff] }
  0x85   : > { %863 = vmatprep.mubr.f32.mxu1 %v361_v53  ;;  %1560 = vmatpush1.bf16.msra.mxu0 %v1976_v43  ;;  %v368_v43 = vld [vmem:[%s1794_s20 + $0x350] sm:$0xff]  ;;  %v265_v52 = vld [vmem:[%s1794_s20 + $0x18] sm:$0xff]  ;;  %v242_v53 = vld [vmem:[%s2116_s19 + $0x80] sm:$0xff] }
  0x87   : > { %599 = vmatmul.mubr.f32.gmra.mrb[32].mxu0 %v326_v27  ;;  %v264_v27 = vld [vmem:[%s1794_s20 + $0x10] sm:$0xff] }
  0x88   : > { %864 = vmatmul.mubr.f32.gmra.mrb[32].mxu1 %v360_v54  ;;  %603 = vmatprep.mubr.f32.mxu0 %v331_v55  ;;  %v243_v54 = vld [vmem:[%s2116_s19 + $0x88] sm:$0xff]  ;;  %v269_v55 = vld [vmem:[%s1794_s20 + $0x38] sm:$0xff] }
  0x89   : > { %868 = vmatprep.mubr.f32.mxu1 %v365_v57  ;;  %v244_v57 = vld [vmem:[%s2116_s19 + $0x90] sm:$0xff] }
  0x8b   : > { %604 = vmatmul.mubr.f32.gmra.mrb[34].mxu0 %v330_v3  ;;  %v268_v3 = vld [vmem:[%s1794_s20 + $0x30] sm:$0xff] }
  0x8c   : > { %869 = vmatmul.mubr.f32.gmra.mrb[34].mxu1 %v364_v34  ;;  %608 = vmatprep.mubr.f32.mxu0 %v335_v58  ;;  %v245_v34 = vld [vmem:[%s2116_s19 + $0x98] sm:$0xff] }
  0x8d   : > { %873 = vmatprep.mubr.f32.mxu1 %v369_v59  ;;  %v273_v58 = vld [vmem:[%s1794_s20 + $0x58] sm:$0xff]  ;;  %v246_v59 = vld [vmem:[%s2116_s19 + $0xa0] sm:$0xff] }
  0x8f   : > { %609 = vmatmul.mubr.f32.gmra.mrb[36].mxu0 %v334_v8  ;;  %v272_v8 = vld [vmem:[%s1794_s20 + $0x50] sm:$0xff] }
  0x90   : > { %874 = vmatmul.mubr.f32.gmra.mrb[36].mxu1 %v368_v43  ;;  %613 = vmatprep.mubr.f32.mxu0 %v339_v60  ;;  %v247_v43 = vld [vmem:[%s2116_s19 + $0xa8] sm:$0xff]  ;;  %v277_v60 = vld [vmem:[%s1794_s20 + $0x78] sm:$0xff] }
  0x91   : > { %878 = vmatprep.mubr.f32.mxu1 %v373_v61  ;;  %v248_v61 = vld [vmem:[%s2116_s19 + $0xb0] sm:$0xff] }
  0x93   : > { %614 = vmatmul.mubr.f32.gmra.mrb[38].mxu0 %v338_v63  ;;  %v276_v63 = vld [vmem:[%s1794_s20 + $0x70] sm:$0xff] }
  0x94   : > { %879 = vmatmul.mubr.f32.gmra.mrb[38].mxu1 %v372_v0  ;;  %618 = vmatprep.mubr.f32.mxu0 %v343_v1  ;;  %v249_v0 = vld [vmem:[%s2116_s19 + $0xb8] sm:$0xff] }
  0x95   : > { %883 = vmatprep.mubr.f32.mxu1 %v377_v12  ;;  %v281_v1 = vld [vmem:[%s1794_s20 + $0x98] sm:$0xff]  ;;  %v250_v12 = vld [vmem:[%s2116_s19 + $0xc0] sm:$0xff] }
  0x97   : > { %619 = vmatmul.mubr.f32.gmra.mrb[40].mxu0 %v342_v2  ;;  %v280_v2 = vld [vmem:[%s1794_s20 + $0x90] sm:$0xff] }
  0x98   : > { %884 = vmatmul.mubr.f32.gmra.mrb[40].mxu1 %v376_v4  ;;  %623 = vmatprep.mubr.f32.mxu0 %v347_v6  ;;  %v251_v4 = vld [vmem:[%s2116_s19 + $0xc8] sm:$0xff]  ;;  %v285_v6 = vld [vmem:[%s1794_s20 + $0xb8] sm:$0xff] }
  0x99   : > { %888 = vmatprep.mubr.f32.mxu1 %v381_v7  ;;  %v252_v7 = vld [vmem:[%s2116_s19 + $0xd0] sm:$0xff] }
  0x9b   : > { %624 = vmatmul.mubr.f32.gmra.mrb[42].mxu0 %v346_v18  ;;  %v284_v18 = vld [vmem:[%s1794_s20 + $0xb0] sm:$0xff] }
  0x9c   : > { %889 = vmatmul.mubr.f32.gmra.mrb[42].mxu1 %v380_v9  ;;  %628 = vmatprep.mubr.f32.mxu0 %v351_v10  ;;  %v253_v9 = vld [vmem:[%s2116_s19 + $0xd8] sm:$0xff] }
  0x9d   : > { %893 = vmatprep.mubr.f32.mxu1 %v385_v11  ;;  %v289_v10 = vld [vmem:[%s1794_s20 + $0xd8] sm:$0xff]  ;;  %v254_v11 = vld [vmem:[%s2116_s19 + $0xe0] sm:$0xff] }
  0x9f   : > { %629 = vmatmul.mubr.f32.gmra.mrb[44].mxu0 %v350_v24  ;;  %v288_v24 = vld [vmem:[%s1794_s20 + $0xd0] sm:$0xff] }
  0xa0   : > { %894 = vmatmul.mubr.f32.gmra.mrb[44].mxu1 %v384_v14  ;;  %633 = vmatprep.mubr.f32.mxu0 %v355_v15  ;;  %v255_v14 = vld [vmem:[%s2116_s19 + $0xe8] sm:$0xff]  ;;  %v293_v15 = vld [vmem:[%s1794_s20 + $0xf8] sm:$0xff] }
  0xa1   : > { %898 = vmatprep.mubr.f32.mxu1 %v389_v16  ;;  %v256_v16 = vld [vmem:[%s2116_s19 + $0xf0] sm:$0xff] }
  0xa3   : > { %634 = vmatmul.mubr.f32.gmra.mrb[46].mxu0 %v354_v30  ;;  %v292_v30 = vld [vmem:[%s1794_s20 + $0xf0] sm:$0xff] }
  0xa4   : > { %899 = vmatmul.mubr.f32.gmra.mrb[46].mxu1 %v388_v17  ;;  %638 = vmatprep.mubr.f32.mxu0 %v359_v19  ;;  %v257_v17 = vld [vmem:[%s2116_s19 + $0xf8] sm:$0xff] }
  0xa5   : > { %1417 = vmatprep.mubr.msk.f32.mxu1 %vm904_vm0, %v226_v21 }
  0xa7   : > { %639 = vmatmul.mubr.f32.gmra.mrb[48].mxu0 %v358_v36 }
  0xa8   : > { %1418 = vmatmul.mubr.msk.f32.vlgmr.msra.gmra.mrb[48].mxu1 %vm904_vm0, %v227_v22  ;;  %643 = vmatprep.mubr.f32.mxu0 %v363_v23 }
  0xa9   : > { %1420 = vmatprep.mubr.msk.f32.mxu1 %vm904_vm0, %v228_v25 }
  0xab   : > { %644 = vmatmul.mubr.f32.gmra.mrb[50].mxu0 %v362_v44 }
  0xac   : > { %1421 = vmatmul.mubr.msk.f32.gmra.mrb[50].mxu1 %vm904_vm0, %v229_v26  ;;  %648 = vmatprep.mubr.f32.mxu0 %v367_v28 }
  0xad   : > { %1423 = vmatprep.mubr.msk.f32.mxu1 %vm904_vm0, %v230_v29 }
  0xaf   : > { %649 = vmatmul.mubr.f32.gmra.mrb[52].mxu0 %v366_v50 }
  0xb0   : > { %1424 = vmatmul.mubr.msk.f32.gmra.mrb[52].mxu1 %vm904_vm0, %v231_v31  ;;  %653 = vmatprep.mubr.f32.mxu0 %v371_v32 }
  0xb1   : > { %1426 = vmatprep.mubr.msk.f32.mxu1 %vm904_vm0, %v232_v33 }
  0xb3   : > { %654 = vmatmul.mubr.f32.gmra.mrb[54].mxu0 %v370_v56 }
  0xb4   : > { %1427 = vmatmul.mubr.msk.f32.gmra.mrb[54].mxu1 %vm904_vm0, %v233_v35  ;;  %658 = vmatprep.mubr.f32.mxu0 %v375_v37 }
  0xb5   : > { %1429 = vmatprep.mubr.msk.f32.mxu1 %vm904_vm0, %v234_v38 }
  0xb7   : > { %659 = vmatmul.mubr.f32.gmra.mrb[56].mxu0 %v374_v62 }
  0xb8   : > { %1430 = vmatmul.mubr.msk.f32.gmra.mrb[56].mxu1 %vm904_vm0, %v235_v39  ;;  %663 = vmatprep.mubr.f32.mxu0 %v379_v40 }
  0xb9   : > { %1432 = vmatprep.mubr.msk.f32.mxu1 %vm904_vm0, %v236_v41 }
  0xbb   : > { %664 = vmatmul.mubr.f32.gmra.mrb[58].mxu0 %v378_v5 }
  0xbc   : > { %1433 = vmatmul.mubr.msk.f32.gmra.mrb[58].mxu1 %vm904_vm0, %v237_v42  ;;  %668 = vmatprep.mubr.f32.mxu0 %v383_v45 }
  0xbd   : > { %1435 = vmatprep.mubr.msk.f32.mxu1 %vm904_vm0, %v238_v46 }
  0xbf   : > { %669 = vmatmul.mubr.f32.gmra.mrb[60].mxu0 %v382_v13 }
  0xc0   : > { %1436 = vmatmul.mubr.msk.f32.gmra.mrb[60].mxu1 %vm904_vm0, %v239_v47  ;;  %673 = vmatprep.mubr.f32.mxu0 %v387_v48 }
  0xc1   : > { %1438 = vmatprep.mubr.msk.f32.mxu1 %vm904_vm0, %v240_v49 }
  0xc3   : > { %674 = vmatmul.mubr.f32.gmra.mrb[62].mxu0 %v386_v20 }
  0xc4   : > { %1439 = vmatmul.mubr.msk.f32.gmra.mrb[62].mxu1 %vm904_vm0, %v241_v51  ;;  %743 = vmatprep.mubr.f32.mxu0 %v265_v52 }
  0xc5   : > { %1441 = vmatprep.mubr.msk.f32.mxu1 %vm904_vm0, %v242_v53 }
  0xc7   : > { %744 = vmatmul.mubr.f32.vlgmr.msra.gmra.mrb[0].mxu0 %v264_v27 }
  0xc8   : > { %1442 = vmatmul.mubr.msk.f32.gmra.mrb[64].mxu1 %vm904_vm0, %v243_v54  ;;  %748 = vmatprep.mubr.f32.mxu0 %v269_v55 }
  0xc9   : > { %1444 = vmatprep.mubr.msk.f32.mxu1 %vm904_vm0, %v244_v57 }
  0xcb   : > { %749 = vmatmul.mubr.f32.gmra.mrb[2].mxu0 %v268_v3 }
  0xcc   : > { %1445 = vmatmul.mubr.msk.f32.gmra.mrb[66].mxu1 %vm904_vm0, %v245_v34  ;;  %753 = vmatprep.mubr.f32.mxu0 %v273_v58 }
  0xcd   : > { %1447 = vmatprep.mubr.msk.f32.mxu1 %vm904_vm0, %v246_v59 }
  0xcf   : > { %754 = vmatmul.mubr.f32.gmra.mrb[4].mxu0 %v272_v8 }
  0xd0   : > { %1448 = vmatmul.mubr.msk.f32.gmra.mrb[68].mxu1 %vm904_vm0, %v247_v43  ;;  %758 = vmatprep.mubr.f32.mxu0 %v277_v60 }
  0xd1   : > { %1450 = vmatprep.mubr.msk.f32.mxu1 %vm904_vm0, %v248_v61 }
  0xd3   : > { %759 = vmatmul.mubr.f32.gmra.mrb[6].mxu0 %v276_v63 }
  0xd4   : > { %1451 = vmatmul.mubr.msk.f32.gmra.mrb[70].mxu1 %vm904_vm0, %v249_v0  ;;  %763 = vmatprep.mubr.f32.mxu0 %v281_v1 }
  0xd5   : > { %1453 = vmatprep.mubr.msk.f32.mxu1 %vm904_vm0, %v250_v12 }
  0xd7   : > { %764 = vmatmul.mubr.f32.gmra.mrb[8].mxu0 %v280_v2 }
  0xd8   : > { %1454 = vmatmul.mubr.msk.f32.gmra.mrb[72].mxu1 %vm904_vm0, %v251_v4  ;;  %768 = vmatprep.mubr.f32.mxu0 %v285_v6 }
  0xd9   : > { %1456 = vmatprep.mubr.msk.f32.mxu1 %vm904_vm0, %v252_v7 }
  0xdb   : > { %769 = vmatmul.mubr.f32.gmra.mrb[10].mxu0 %v284_v18 }
  0xdc   : > { %1457 = vmatmul.mubr.msk.f32.gmra.mrb[74].mxu1 %vm904_vm0, %v253_v9  ;;  %773 = vmatprep.mubr.f32.mxu0 %v289_v10 }
  0xdd   : > { %1459 = vmatprep.mubr.msk.f32.mxu1 %vm904_vm0, %v254_v11 }
  0xdf   : > { %774 = vmatmul.mubr.f32.gmra.mrb[12].mxu0 %v288_v24 }
  0xe0   : > { %1460 = vmatmul.mubr.msk.f32.gmra.mrb[76].mxu1 %vm904_vm0, %v255_v14  ;;  %778 = vmatprep.mubr.f32.mxu0 %v293_v15 }
  0xe1   : > { %1462 = vmatprep.mubr.msk.f32.mxu1 %vm904_vm0, %v256_v16 }
  0xe3   : > { %779 = vmatmul.mubr.f32.gmra.mrb[14].mxu0 %v292_v30 }
  0xe4   : > { %1463 = vmatmul.mubr.msk.f32.gmra.mrb[78].mxu1 %vm904_vm0, %v257_v17 }
 0x11b   : > { %v785_v19 = vpop.f32.mrb[0].mxu1 }
 0x11c   : > { %v787_v21 = vpop.f32.mrb[1].mxu1 }
 0x11f   : > { %v790_v36 = vpop.f32.mrb[2].mxu1 }
 0x120   : > { %v792_v22 = vpop.f32.mrb[3].mxu1 }
 0x123   : > { %v795_v23 = vpop.f32.mrb[4].mxu1 }
 0x124   : > { %v797_v25 = vpop.f32.mrb[5].mxu1 }
 0x127   : > { %v800_v44 = vpop.f32.mrb[6].mxu1 }
 0x128   : > { %v802_v26 = vpop.f32.mrb[7].mxu1 }
 0x12b   : > { %v805_v28 = vpop.f32.mrb[8].mxu1 }
 0x12c   : > { %v807_v29 = vpop.f32.mrb[9].mxu1 }
 0x12f   : > { %v810_v50 = vpop.f32.mrb[10].mxu1 }
 0x130   : > { %v812_v31 = vpop.f32.mrb[11].mxu1 }
 0x133   : > { %v815_v32 = vpop.f32.mrb[12].mxu1 }
 0x134   : > { %v817_v33 = vpop.f32.mrb[13].mxu1 }
 0x137   : > { %v820_v56 = vpop.f32.mrb[14].mxu1 }
 0x138   : > { %v822_v35 = vpop.f32.mrb[15].mxu1 }
 0x13a   : > { %v560_v37 = vpop.f32.mrb[16].mxu0 }
 0x13b   : > { %v2216_v38 = vadd.f32 %v785_v19, %v560_v37  ;;  %v825_v62 = vpop.f32.mrb[16].mxu1  ;;  %v562_v39 = vpop.f32.mrb[17].mxu0 }
 0x13c   : > { %v827_v40 = vpop.f32.mrb[17].mxu1 }
 0x13e   : > { %v565_v41 = vpop.f32.mrb[18].mxu0 }
 0x13f   : > { %v2218_v5 = vadd.f32 %v790_v36, %v565_v41  ;;  %v830_v42 = vpop.f32.mrb[18].mxu1  ;;  %v567_v45 = vpop.f32.mrb[19].mxu0 }
 0x140   : > { %v832_v46 = vpop.f32.mrb[19].mxu1 }
 0x142   : > { %v570_v13 = vpop.f32.mrb[20].mxu0 }
 0x143   : > { %v2220_v47 = vadd.f32 %v795_v23, %v570_v13  ;;  %v835_v48 = vpop.f32.mrb[20].mxu1  ;;  %v572_v49 = vpop.f32.mrb[21].mxu0 }
 0x144   : > { %v837_v20 = vpop.f32.mrb[21].mxu1 }
 0x146   : > { %v575_v51 = vpop.f32.mrb[22].mxu0 }
 0x147   : > { %v2222_v52 = vadd.f32 %v800_v44, %v575_v51  ;;  %v840_v53 = vpop.f32.mrb[22].mxu1  ;;  %v577_v27 = vpop.f32.mrb[23].mxu0 }
 0x148   : > { %v842_v54 = vpop.f32.mrb[23].mxu1 }
 0x14a   : > { %v580_v55 = vpop.f32.mrb[24].mxu0 }
 0x14b   : > { %v2224_v57 = vadd.f32 %v805_v28, %v580_v55  ;;  %v845_v3 = vpop.f32.mrb[24].mxu1  ;;  %v582_v34 = vpop.f32.mrb[25].mxu0 }
 0x14c   : > { %v847_v58 = vpop.f32.mrb[25].mxu1 }
 0x14e   : > { %v585_v59 = vpop.f32.mrb[26].mxu0 }
 0x14f   : > { %v2226_v8 = vadd.f32 %v810_v50, %v585_v59  ;;  %v850_v43 = vpop.f32.mrb[26].mxu1  ;;  %v587_v60 = vpop.f32.mrb[27].mxu0 }
 0x150   : > { %v852_v61 = vpop.f32.mrb[27].mxu1 }
 0x152   : > { %v590_v63 = vpop.f32.mrb[28].mxu0 }
 0x153   : > { %v2228_v0 = vadd.f32 %v815_v32, %v590_v63  ;;  %v855_v1 = vpop.f32.mrb[28].mxu1  ;;  %v592_v12 = vpop.f32.mrb[29].mxu0 }
 0x154   : > { %v857_v2 = vpop.f32.mrb[29].mxu1 }
 0x156   : > { %v595_v4 = vpop.f32.mrb[30].mxu0 }
 0x157   : > { %v2230_v6 = vadd.f32 %v820_v56, %v595_v4  ;;  %v860_v7 = vpop.f32.mrb[30].mxu1  ;;  %v597_v18 = vpop.f32.mrb[31].mxu0 }
 0x158   : > { %v862_v9 = vpop.f32.mrb[31].mxu1 }
 0x15a   : > { %v600_v10 = vpop.f32.mrb[32].mxu0 }
 0x15b   : > { %v2232_v11 = vadd.f32 %v825_v62, %v600_v10  ;;  %v865_v24 = vpop.f32.mrb[32].mxu1  ;;  %v602_v14 = vpop.f32.mrb[33].mxu0 }
 0x15c   : > { %v867_v15 = vpop.f32.mrb[33].mxu1 }
 0x15e   : > { %v605_v16 = vpop.f32.mrb[34].mxu0 }
 0x15f   : > { %v2234_v30 = vadd.f32 %v830_v42, %v605_v16  ;;  %v870_v17 = vpop.f32.mrb[34].mxu1  ;;  %v607_v19 = vpop.f32.mrb[35].mxu0 }
 0x160   : > { %v872_v21 = vpop.f32.mrb[35].mxu1 }
 0x162   : > { %v610_v36 = vpop.f32.mrb[36].mxu0 }
 0x163   : > { %v2236_v22 = vadd.f32 %v835_v48, %v610_v36  ;;  %v875_v23 = vpop.f32.mrb[36].mxu1  ;;  %v612_v25 = vpop.f32.mrb[37].mxu0 }
 0x164   : > { %v877_v44 = vpop.f32.mrb[37].mxu1 }
 0x166   : > { %v615_v26 = vpop.f32.mrb[38].mxu0 }
 0x167   : > { %v2238_v28 = vadd.f32 %v840_v53, %v615_v26  ;;  %v880_v29 = vpop.f32.mrb[38].mxu1  ;;  %v617_v50 = vpop.f32.mrb[39].mxu0 }
 0x168   : > { %v882_v31 = vpop.f32.mrb[39].mxu1 }
 0x16a   : > { %v620_v32 = vpop.f32.mrb[40].mxu0 }
 0x16b   : > { %v2240_v33 = vadd.f32 %v845_v3, %v620_v32  ;;  %v885_v56 = vpop.f32.mrb[40].mxu1  ;;  %v622_v35 = vpop.f32.mrb[41].mxu0 }
 0x16c   : > { %v887_v37 = vpop.f32.mrb[41].mxu1 }
 0x16e   : > { %v625_v62 = vpop.f32.mrb[42].mxu0 }
 0x16f   : > { %v2242_v39 = vadd.f32 %v850_v43, %v625_v62  ;;  %v890_v40 = vpop.f32.mrb[42].mxu1  ;;  %v627_v41 = vpop.f32.mrb[43].mxu0 }
 0x170   : > { %v892_v42 = vpop.f32.mrb[43].mxu1 }
 0x172   : > { %v630_v45 = vpop.f32.mrb[44].mxu0 }
 0x173   : > { %v2244_v46 = vadd.f32 %v855_v1, %v630_v45  ;;  %v895_v13 = vpop.f32.mrb[44].mxu1  ;;  %v632_v48 = vpop.f32.mrb[45].mxu0 }
 0x174   : > { %v897_v49 = vpop.f32.mrb[45].mxu1 }
 0x176   : > { %v635_v20 = vpop.f32.mrb[46].mxu0 }
 0x177   : > { %v2246_v51 = vadd.f32 %v860_v7, %v635_v20  ;;  %v900_v53 = vpop.f32.mrb[46].mxu1  ;;  %v637_v27 = vpop.f32.mrb[47].mxu0 }
 0x178   : > { %v902_v54 = vpop.f32.mrb[47].mxu1 }
 0x17a   : > { %v640_v55 = vpop.f32.mrb[48].mxu0 }
 0x17b   : > { %v2248_v3 = vadd.f32 %v865_v24, %v640_v55  ;;  %v2250_v34 = vpop.f32.mrb[48].mxu1  ;;  %v642_v58 = vpop.f32.mrb[49].mxu0 }
 0x17c   : > { %v1067_v59 = vpop.f32.mrb[49].mxu1 }
 0x17e   : > { %v645_v43 = vpop.f32.mrb[50].mxu0 }
 0x17f   : > { %v2252_v60 = vadd.f32 %v870_v17, %v645_v43  ;;  %v2254_v61 = vpop.f32.mrb[50].mxu1  ;;  %v647_v63 = vpop.f32.mrb[51].mxu0 }
 0x180   : > { %v2256_v1 = vpop.f32.mrb[51].mxu1 }
 0x182   : > { %v650_v12 = vpop.f32.mrb[52].mxu0 }
 0x183   : > { %v2258_v2 = vadd.f32 %v875_v23, %v650_v12  ;;  %v2260_v4 = vpop.f32.mrb[52].mxu1  ;;  %v652_v7 = vpop.f32.mrb[53].mxu0 }
 0x184   : > { %v2262_v18 = vpop.f32.mrb[53].mxu1 }
 0x186   : > { %v655_v9 = vpop.f32.mrb[54].mxu0 }
 0x187   : > { %v2264_v10 = vadd.f32 %v880_v29, %v655_v9  ;;  %v2266_v24 = vpop.f32.mrb[54].mxu1  ;;  %v657_v14 = vpop.f32.mrb[55].mxu0 }
 0x188   : > { %v2268_v15 = vpop.f32.mrb[55].mxu1 }
 0x18a   : > { %v660_v16 = vpop.f32.mrb[56].mxu0 }
 0x18b   : > { %v2270_v17 = vadd.f32 %v885_v56, %v660_v16  ;;  %v1431_v19 = vpop.f32.mrb[56].mxu1  ;;  %v662_v21 = vpop.f32.mrb[57].mxu0 }
 0x18c   : > { %v1113_v36 = vadd.f32 %v1431_v19, %v2218_v5  ;;  %v1107_v23 = vpop.f32.mrb[57].mxu1 }
 0x18d   : > { %v1108_v25 = vadd.f32 %v1107_v23, %v2216_v38 }
 0x18e   : > { %1235 = vst [vmem:[%s2277_s22 + $0x48] sm:$0xff] %v1113_v36  ;;  %v665_v44 = vpop.f32.mrb[58].mxu0 }
 0x18f   : > { %1234 = vst [vmem:[%s2277_s22 + $0x40] sm:$0xff] %v1108_v25  ;;  %v2283_v26 = vadd.f32 %v890_v40, %v665_v44  ;;  %v1434_v29 = vpop.f32.mrb[58].mxu1  ;;  %v667_v50 = vpop.f32.mrb[59].mxu0 }
 0x190   : > { %v1123_v31 = vadd.f32 %v1434_v29, %v2222_v52  ;;  %v1117_v32 = vpop.f32.mrb[59].mxu1 }
 0x191   : > { %v1118_v56 = vadd.f32 %v1117_v32, %v2220_v47 }
 0x192   : > { %1237 = vst [vmem:[%s2277_s22 + $0x58] sm:$0xff] %v1123_v31  ;;  %v670_v35 = vpop.f32.mrb[60].mxu0 }
 0x193   : > { %1236 = vst [vmem:[%s2277_s22 + $0x50] sm:$0xff] %v1118_v56  ;;  %v2289_v5 = vadd.f32 %v895_v13, %v670_v35  ;;  %v1437_v38 = vpop.f32.mrb[60].mxu1  ;;  %v672_v37 = vpop.f32.mrb[61].mxu0 }
 0x194   : > { %v1133_v62 = vadd.f32 %v1437_v38, %v2226_v8  ;;  %v1127_v40 = vpop.f32.mrb[61].mxu1 }
 0x195   : > { %v1128_v41 = vadd.f32 %v1127_v40, %v2224_v57 }
 0x196   : > { %1239 = vst [vmem:[%s2277_s22 + $0x68] sm:$0xff] %v1133_v62  ;;  %v675_v42 = vpop.f32.mrb[62].mxu0 }
 0x197   : > { %1238 = vst [vmem:[%s2277_s22 + $0x60] sm:$0xff] %v1128_v41  ;;  %v2295_v52 = vadd.f32 %v900_v53, %v675_v42  ;;  %v1440_v47 = vpop.f32.mrb[62].mxu1  ;;  %v677_v45 = vpop.f32.mrb[63].mxu0 }
 0x198   : > { %v1143_v13 = vadd.f32 %v1440_v47, %v2230_v6  ;;  %v1137_v48 = vpop.f32.mrb[63].mxu1 }
 0x199   : > { %v1138_v49 = vadd.f32 %v1137_v48, %v2228_v0 }
 0x19a   : > { %1241 = vst [vmem:[%s2277_s22 + $0x78] sm:$0xff] %v1143_v13  ;;  %v745_v8 = vpop.f32.mrb[0].mxu0 }
 0x19b   : > { %1240 = vst [vmem:[%s2277_s22 + $0x70] sm:$0xff] %v1138_v49  ;;  %v1068_v57 = vadd.f32 %v1067_v59, %v745_v8  ;;  %v1443_v20 = vpop.f32.mrb[64].mxu1  ;;  %v747_v27 = vpop.f32.mrb[1].mxu0 }
 0x19c   : > { %v1153_v53 = vadd.f32 %v1443_v20, %v2234_v30  ;;  %v1147_v54 = vpop.f32.mrb[65].mxu1 }
 0x19d   : > { %1226 = vst [vmem:[%s2277_s22] sm:$0xff] %v1068_v57  ;;  %v1148_v55 = vadd.f32 %v1147_v54, %v2232_v11 }
 0x19e   : > { %1243 = vst [vmem:[%s2277_s22 + $0x88] sm:$0xff] %v1153_v53  ;;  %v750_v6 = vpop.f32.mrb[2].mxu0 }
 0x19f   : > { %1242 = vst [vmem:[%s2277_s22 + $0x80] sm:$0xff] %v1148_v55  ;;  %v1073_v0 = vadd.f32 %v2250_v34, %v750_v6  ;;  %v1446_v58 = vpop.f32.mrb[66].mxu1  ;;  %v752_v43 = vpop.f32.mrb[3].mxu0 }
 0x1a0   : > { %v1163_v59 = vadd.f32 %v1446_v58, %v2238_v28  ;;  %v1157_v63 = vpop.f32.mrb[67].mxu1 }
 0x1a1   : > { %1227 = vst [vmem:[%s2277_s22 + $0x8] sm:$0xff] %v1073_v0  ;;  %v1158_v30 = vadd.f32 %v1157_v63, %v2236_v22 }
 0x1a2   : > { %1245 = vst [vmem:[%s2277_s22 + $0x98] sm:$0xff] %v1163_v59  ;;  %v755_v12 = vpop.f32.mrb[4].mxu0 }
 0x1a3   : > { %1244 = vst [vmem:[%s2277_s22 + $0x90] sm:$0xff] %v1158_v30  ;;  %v1078_v11 = vadd.f32 %v2256_v1, %v755_v12  ;;  %v1449_v7 = vpop.f32.mrb[68].mxu1  ;;  %v757_v9 = vpop.f32.mrb[5].mxu0 }
 0x1a4   : > { %v1173_v34 = vadd.f32 %v1449_v7, %v2242_v39  ;;  %v1167_v14 = vpop.f32.mrb[69].mxu1 }
 0x1a5   : > { %1228 = vst [vmem:[%s2277_s22 + $0x10] sm:$0xff] %v1078_v11  ;;  %v1168_v28 = vadd.f32 %v1167_v14, %v2240_v33 }
 0x1a6   : > { %1247 = vst [vmem:[%s2277_s22 + $0xa8] sm:$0xff] %v1173_v34  ;;  %v760_v16 = vpop.f32.mrb[6].mxu0 }
 0x1a7   : > { %1246 = vst [vmem:[%s2277_s22 + $0xa0] sm:$0xff] %v1168_v28  ;;  %v1083_v22 = vadd.f32 %v2254_v61, %v760_v16  ;;  %v1452_v19 = vpop.f32.mrb[70].mxu1  ;;  %v762_v21 = vpop.f32.mrb[7].mxu0 }
 0x1a8   : > { %v1183_v1 = vadd.f32 %v1452_v19, %v2246_v51  ;;  %v1177_v36 = vpop.f32.mrb[71].mxu1 }
 0x1a9   : > { %1229 = vst [vmem:[%s2277_s22 + $0x18] sm:$0xff] %v1083_v22  ;;  %v1178_v39 = vadd.f32 %v1177_v36, %v2244_v46 }
 0x1aa   : > { %1249 = vst [vmem:[%s2277_s22 + $0xb8] sm:$0xff] %v1183_v1  ;;  %v765_v23 = vpop.f32.mrb[8].mxu0 }
 0x1ab   : > { %1248 = vst [vmem:[%s2277_s22 + $0xb0] sm:$0xff] %v1178_v39  ;;  %v1088_v33 = vadd.f32 %v2262_v18, %v765_v23  ;;  %v1455_v25 = vpop.f32.mrb[72].mxu1  ;;  %v767_v44 = vpop.f32.mrb[9].mxu0 }
 0x1ac   : > { %v1193_v61 = vadd.f32 %v1455_v25, %v2252_v60  ;;  %v1187_v29 = vpop.f32.mrb[73].mxu1 }
 0x1ad   : > { %1230 = vst [vmem:[%s2277_s22 + $0x20] sm:$0xff] %v1088_v33  ;;  %v1188_v51 = vadd.f32 %v1187_v29, %v2248_v3 }
 0x1ae   : > { %1251 = vst [vmem:[%s2277_s22 + $0xc8] sm:$0xff] %v1193_v61  ;;  %v770_v50 = vpop.f32.mrb[10].mxu0 }
 0x1af   : > { %1250 = vst [vmem:[%s2277_s22 + $0xc0] sm:$0xff] %v1188_v51  ;;  %v1093_v46 = vadd.f32 %v2260_v4, %v770_v50  ;;  %v1458_v31 = vpop.f32.mrb[74].mxu1  ;;  %v772_v32 = vpop.f32.mrb[11].mxu0 }
 0x1b0   : > { %v1203_v18 = vadd.f32 %v1458_v31, %v2264_v10  ;;  %v1197_v56 = vpop.f32.mrb[75].mxu1 }
 0x1b1   : > { %1231 = vst [vmem:[%s2277_s22 + $0x28] sm:$0xff] %v1093_v46  ;;  %v1198_v60 = vadd.f32 %v1197_v56, %v2258_v2 }
 0x1b2   : > { %1253 = vst [vmem:[%s2277_s22 + $0xd8] sm:$0xff] %v1203_v18  ;;  %v775_v35 = vpop.f32.mrb[12].mxu0 }
 0x1b3   : > { %1252 = vst [vmem:[%s2277_s22 + $0xd0] sm:$0xff] %v1198_v60  ;;  %v1098_v3 = vadd.f32 %v2268_v15, %v775_v35  ;;  %v1461_v38 = vpop.f32.mrb[76].mxu1  ;;  %v777_v37 = vpop.f32.mrb[13].mxu0 }
 0x1b4   : > { %v1213_v4 = vadd.f32 %v1461_v38, %v2283_v26  ;;  %v1207_v62 = vpop.f32.mrb[77].mxu1 }
 0x1b5   : > { %1232 = vst [vmem:[%s2277_s22 + $0x30] sm:$0xff] %v1098_v3  ;;  %v1208_v10 = vadd.f32 %v1207_v62, %v2270_v17 }
 0x1b6   : > { %1255 = vst [vmem:[%s2277_s22 + $0xe8] sm:$0xff] %v1213_v4  ;;  %v780_v40 = vpop.f32.mrb[14].mxu0 }
 0x1b7   : > { %1254 = vst [vmem:[%s2277_s22 + $0xe0] sm:$0xff] %v1208_v10  ;;  %v1103_v2 = vadd.f32 %v2266_v24, %v780_v40  ;;  %v1464_v41 = vpop.f32.mrb[78].mxu1  ;;  %v782_v42 = vpop.f32.mrb[15].mxu0 }
 0x1b8   : > { %v1223_v47 = vadd.f32 %v1464_v41, %v2295_v52  ;;  %v1217_v15 = vpop.f32.mrb[79].mxu1 }
 0x1b9   : > { %1233 = vst [vmem:[%s2277_s22 + $0x38] sm:$0xff] %v1103_v2  ;;  %v1218_v45 = vadd.f32 %v1217_v15, %v2289_v5 }
 0x1ba   : > { %1257 = vst [vmem:[%s2277_s22 + $0xf8] sm:$0xff] %v1223_v47 }
 0x1bb   : > { %1256 = vst [vmem:[%s2277_s22 + $0xf0] sm:$0xff] %v1218_v45 }
 0x1bc PF: > { %s14_s15 = sadd.s32 1, %s1656_s15  }
 0x1bd   : > { %p11_p4 = scmp.ge.s32.totalorder %s14_s15, 4  }
 0x1bf   :  { %13 = sbr.rel (!%p11_p4) target bundleno = 1 (0x1), region = 69 }

// kernel: two_order_forward.5
= control target key start
LH: loop header
LB: loop body
LE: loop exit
PB: predicated region body
PF: predicated region fallthrough
CT: control target
= control target key end

     0   :  { %vm37_vm0 = vcmask 261120   ;;  %s803_s3 = inlined_call_operand.vmem [shape: f32[32,128], index: 3, kind: input, shape index: {}]   ;;  %s804_s2 = inlined_call_operand.vmem [shape: f32[16,32], index: 2, kind: input, shape index: {}]   ;;  %s805_s1 = inlined_call_operand.vmem [shape: f32[512,128], index: 1, kind: input, shape index: {}]   ;;  %s806_s0 = inlined_call_operand.vmem [shape: f32[16,512], index: 0, kind: input, shape index: {}]   ;;  %s807_s4 = inlined_call_operand.vmem [shape: f32[1,128], index: 4, kind: input, shape index: {}]   ;;  %s808_s5 = inlined_call_operand.vmem [shape: f32[16,128], index: 5, kind: output, shape index: {}]  }
   0x1   :  { %v26_v0 = vld [vmem:[%s803_s3] sm:$0xff]  ;;  %v27_v1 = vld [vmem:[%s803_s3 + $0x8] sm:$0xff]  ;;  %v28_v2 = vld [vmem:[%s803_s3 + $0x10] sm:$0xff] }
   0x2   :  { %v456_v3 = vpack.c.bf16 %v27_v1, %v26_v0  ;;  %v29_v4 = vld [vmem:[%s803_s3 + $0x18] sm:$0xff]  ;;  %v24_v5 = vld [vmem:[%s804_s2] sm:$0xff]  ;;  %v148_v8 = vld [vmem:[%s805_s1 + $0x88] sm:$0xff] }
   0x3   :  { %v460_v6 = vpack.c.bf16 %v29_v4, %v28_v2  ;;  %453 = vmatprep.mubr.msk.f32.mxu0 %vm37_vm0, %v24_v5  ;;  %v147_v7 = vld [vmem:[%s805_s1 + $0x80] sm:$0xff]  ;;  %v132_v11 = vld [vmem:[%s805_s1 + $0x8] sm:$0xff]  ;;  %v149_v17 = vld [vmem:[%s805_s1 + $0x90] sm:$0xff] }
   0x4   :  { %v131_v9 = vld [vmem:[%s805_s1] sm:$0xff]  ;;  %457 = vmatprep.subr.bf16.mxu0 %v456_v3  ;;  %v464_v10 = vpack.c.bf16 %v148_v8, %v147_v7  ;;  %v180_v13 = vld [vmem:[%s805_s1 + $0x188] sm:$0xff]  ;;  %v150_v19 = vld [vmem:[%s805_s1 + $0x98] sm:$0xff] }
   0x5   :  { %v179_v12 = vld [vmem:[%s805_s1 + $0x180] sm:$0xff]  ;;  %459 = vmatpush3.bf16.msra.mxu0 %v456_v3  ;;  %v466_v14 = vpack.c.bf16 %v132_v11, %v131_v9  ;;  %v164_v16 = vld [vmem:[%s805_s1 + $0x108] sm:$0xff]  ;;  %v133_v20 = vld [vmem:[%s805_s1 + $0x10] sm:$0xff]  ;;  %v468_v22 = vpack.c.bf16 %v150_v19, %v149_v17 }
   0x6   :  { %v163_v15 = vld [vmem:[%s805_s1 + $0x100] sm:$0xff]  ;;  %461 = vmatprep.subr.bf16.mxu0 %v460_v6  ;;  %465 = vmatprep.subr.bf16.mxu1 %v464_v10  ;;  %v496_v18 = vpack.c.bf16 %v180_v13, %v179_v12  ;;  %v134_v21 = vld [vmem:[%s805_s1 + $0x18] sm:$0xff]  ;;  %v181_v24 = vld [vmem:[%s805_s1 + $0x190] sm:$0xff] }
   0x7   :  { %467 = vmatpush3.bf16.msra.mxu1 %v466_v14  ;;  %v470_v23 = vpack.c.bf16 %v134_v21, %v133_v20  ;;  %v182_v25 = vld [vmem:[%s805_s1 + $0x198] sm:$0xff]  ;;  %v151_v26 = vld [vmem:[%s805_s1 + $0xa0] sm:$0xff]  ;;  %v152_v27 = vld [vmem:[%s805_s1 + $0xa8] sm:$0xff]  ;;  %v498_v29 = vpack.c.bf16 %v164_v16, %v163_v15 }
   0x8   :  { %v25_v28 = vld [vmem:[%s804_s2 + $0x8] sm:$0xff]  ;;  %469 = vmatprep.subr.bf16.mxu1 %v468_v22  ;;  %v472_v30 = vpack.c.bf16 %v152_v27, %v151_v26  ;;  %v135_v31 = vld [vmem:[%s805_s1 + $0x20] sm:$0xff]  ;;  %v500_v33 = vpack.c.bf16 %v182_v25, %v181_v24  ;;  %v165_v34 = vld [vmem:[%s805_s1 + $0x110] sm:$0xff] }
   0x9   :  { %463 = vmatpush3.bf16.msra.mxu0 %v460_v6  ;;  %v136_v32 = vld [vmem:[%s805_s1 + $0x28] sm:$0xff]  ;;  %v166_v35 = vld [vmem:[%s805_s1 + $0x118] sm:$0xff]  ;;  %v183_v36 = vld [vmem:[%s805_s1 + $0x1a0] sm:$0xff] }
   0xa   :  { %497 = vmatprep.subr.bf16.mxu0 %v496_v18  ;;  %v474_v37 = vpack.c.bf16 %v136_v32, %v135_v31  ;;  %v184_v38 = vld [vmem:[%s805_s1 + $0x1a8] sm:$0xff]  ;;  %v153_v39 = vld [vmem:[%s805_s1 + $0xb0] sm:$0xff]  ;;  %v154_v40 = vld [vmem:[%s805_s1 + $0xb8] sm:$0xff]  ;;  %v502_v44 = vpack.c.bf16 %v166_v35, %v165_v34 }
   0xb   :  { %471 = vmatpush3.bf16.msra.mxu1 %v470_v23  ;;  %v476_v41 = vpack.c.bf16 %v154_v40, %v153_v39  ;;  %v137_v42 = vld [vmem:[%s805_s1 + $0x30] sm:$0xff]  ;;  %v138_v43 = vld [vmem:[%s805_s1 + $0x38] sm:$0xff]  ;;  %v155_v45 = vld [vmem:[%s805_s1 + $0xc0] sm:$0xff]  ;;  %v504_v46 = vpack.c.bf16 %v184_v38, %v183_v36 }
   0xc   :  { %454 = vmatmul.mubr.msk.f32.vlgmr.msra.gmra.mrb[0].mxu0 %vm37_vm0, %v25_v28  ;;  %473 = vmatprep.subr.bf16.mxu1 %v472_v30  ;;  %v167_v47 = vld [vmem:[%s805_s1 + $0x120] sm:$0xff]  ;;  %v168_v48 = vld [vmem:[%s805_s1 + $0x128] sm:$0xff]  ;;  %v478_v50 = vpack.c.bf16 %v138_v43, %v137_v42  ;;  %v185_v51 = vld [vmem:[%s805_s1 + $0x1b0] sm:$0xff] }
   0xd   :  { %499 = vmatpush3.bf16.msra.mxu0 %v498_v29  ;;  %v156_v49 = vld [vmem:[%s805_s1 + $0xc8] sm:$0xff]  ;;  %v186_v52 = vld [vmem:[%s805_s1 + $0x1b8] sm:$0xff]  ;;  %v139_v54 = vld [vmem:[%s805_s1 + $0x40] sm:$0xff]  ;;  %v506_v56 = vpack.c.bf16 %v168_v48, %v167_v47 }
   0xe   :  { %501 = vmatprep.subr.bf16.mxu0 %v500_v33  ;;  %v480_v53 = vpack.c.bf16 %v156_v49, %v155_v45  ;;  %v140_v55 = vld [vmem:[%s805_s1 + $0x48] sm:$0xff]  ;;  %v157_v57 = vld [vmem:[%s805_s1 + $0xd0] sm:$0xff]  ;;  %v158_v58 = vld [vmem:[%s805_s1 + $0xd8] sm:$0xff]  ;;  %v508_v59 = vpack.c.bf16 %v186_v52, %v185_v51 }
   0xf   :  { %475 = vmatpush3.bf16.msra.mxu1 %v474_v37  ;;  %v169_v60 = vld [vmem:[%s805_s1 + $0x130] sm:$0xff]  ;;  %v170_v61 = vld [vmem:[%s805_s1 + $0x138] sm:$0xff]  ;;  %v482_v62 = vpack.c.bf16 %v140_v55, %v139_v54  ;;  %v187_v63 = vld [vmem:[%s805_s1 + $0x1c0] sm:$0xff]  ;;  %v484_v1 = vpack.c.bf16 %v158_v58, %v157_v57 }
  0x10   :  { %477 = vmatprep.subr.bf16.mxu1 %v476_v41  ;;  %v188_v0 = vld [vmem:[%s805_s1 + $0x1c8] sm:$0xff]  ;;  %v141_v2 = vld [vmem:[%s805_s1 + $0x50] sm:$0xff]  ;;  %v142_v3 = vld [vmem:[%s805_s1 + $0x58] sm:$0xff]  ;;  %v510_v4 = vpack.c.bf16 %v170_v61, %v169_v60 }
  0x11   :  { %503 = vmatpush3.bf16.msra.mxu0 %v502_v44  ;;  %v159_v5 = vld [vmem:[%s805_s1 + $0xe0] sm:$0xff]  ;;  %v160_v6 = vld [vmem:[%s805_s1 + $0xe8] sm:$0xff]  ;;  %v512_v7 = vpack.c.bf16 %v188_v0, %v187_v63  ;;  %v486_v10 = vpack.c.bf16 %v142_v3, %v141_v2  ;;  %v189_v11 = vld [vmem:[%s805_s1 + $0x1d0] sm:$0xff] }
  0x12   :  { %505 = vmatprep.subr.bf16.mxu0 %v504_v46  ;;  %v171_v8 = vld [vmem:[%s805_s1 + $0x140] sm:$0xff]  ;;  %v172_v9 = vld [vmem:[%s805_s1 + $0x148] sm:$0xff]  ;;  %v190_v12 = vld [vmem:[%s805_s1 + $0x1d8] sm:$0xff]  ;;  %v488_v13 = vpack.c.bf16 %v160_v6, %v159_v5 }
  0x13   :  { %479 = vmatpush3.bf16.msra.mxu1 %v478_v50  ;;  %v143_v14 = vld [vmem:[%s805_s1 + $0x60] sm:$0xff]  ;;  %v144_v15 = vld [vmem:[%s805_s1 + $0x68] sm:$0xff]  ;;  %v514_v17 = vpack.c.bf16 %v172_v9, %v171_v8  ;;  %v161_v18 = vld [vmem:[%s805_s1 + $0xf0] sm:$0xff]  ;;  %v516_v21 = vpack.c.bf16 %v190_v12, %v189_v11 }
  0x14   :  { %481 = vmatprep.subr.bf16.mxu1 %v480_v53  ;;  %v124_v16 = vld [vmem:[%s806_s0 + $0x8] sm:$0xff]  ;;  %v162_v19 = vld [vmem:[%s805_s1 + $0xf8] sm:$0xff]  ;;  %v173_v22 = vld [vmem:[%s805_s1 + $0x150] sm:$0xff]  ;;  %v490_v24 = vpack.c.bf16 %v144_v15, %v143_v14 }
  0x15   :  { %507 = vmatpush3.bf16.msra.mxu0 %v506_v56  ;;  %259 = vmatprep.mubr.f32.mxu1 %v124_v16  ;;  %v126_v20 = vld [vmem:[%s806_s0 + $0x18] sm:$0xff]  ;;  %v191_v25 = vld [vmem:[%s805_s1 + $0x1e0] sm:$0xff]  ;;  %v192_v26 = vld [vmem:[%s805_s1 + $0x1e8] sm:$0xff]  ;;  %v492_v27 = vpack.c.bf16 %v162_v19, %v161_v18 }
  0x16   :  { %509 = vmatprep.subr.bf16.mxu0 %v508_v59  ;;  %v174_v23 = vld [vmem:[%s805_s1 + $0x158] sm:$0xff]  ;;  %334 = vmatprep.mubr.f32.mxu0 %v126_v20  ;;  %v145_v28 = vld [vmem:[%s805_s1 + $0x70] sm:$0xff]  ;;  %v520_v31 = vpack.c.bf16 %v192_v26, %v191_v25  ;;  %v175_v32 = vld [vmem:[%s805_s1 + $0x160] sm:$0xff] }
  0x17   :  { %483 = vmatpush3.bf16.msra.mxu1 %v482_v62  ;;  %v146_v29 = vld [vmem:[%s805_s1 + $0x78] sm:$0xff]  ;;  %v518_v30 = vpack.c.bf16 %v174_v23, %v173_v22  ;;  %v176_v33 = vld [vmem:[%s805_s1 + $0x168] sm:$0xff]  ;;  %v193_v35 = vld [vmem:[%s805_s1 + $0x1f0] sm:$0xff] }
  0x18   :  { %485 = vmatprep.subr.bf16.mxu1 %v484_v1  ;;  %v494_v34 = vpack.c.bf16 %v146_v29, %v145_v28  ;;  %v194_v36 = vld [vmem:[%s805_s1 + $0x1f8] sm:$0xff]  ;;  %v522_v37 = vpack.c.bf16 %v176_v33, %v175_v32  ;;  %v177_v39 = vld [vmem:[%s805_s1 + $0x170] sm:$0xff]  ;;  %v123_v41 = vld [vmem:[%s806_s0] sm:$0xff] }
  0x19   :  { %511 = vmatpush3.bf16.msra.mxu0 %v510_v4  ;;  %v524_v38 = vpack.c.bf16 %v194_v36, %v193_v35  ;;  %v178_v40 = vld [vmem:[%s805_s1 + $0x178] sm:$0xff]  ;;  %v128_v42 = vld [vmem:[%s806_s0 + $0x28] sm:$0xff]  ;;  %v127_v44 = vld [vmem:[%s806_s0 + $0x20] sm:$0xff] }
  0x1a   :  { %513 = vmatprep.subr.bf16.mxu0 %v512_v7  ;;  %v526_v43 = vpack.c.bf16 %v178_v40, %v177_v39  ;;  %v125_v45 = vld [vmem:[%s806_s0 + $0x10] sm:$0xff]  ;;  %v130_v46 = vld [vmem:[%s806_s0 + $0x38] sm:$0xff]  ;;  %v360_v57 = vld [vmem:[%s807_s4] ss:$0 sm:$0xff] }
  0x1b   :  { %487 = vmatpush3.bf16.msra.mxu1 %v486_v10  ;;  %v129_v47 = vld [vmem:[%s806_s0 + $0x30] sm:$0xff] }
  0x1c   :  { %489 = vmatprep.subr.bf16.mxu1 %v488_v13 }
  0x1d   :  { %515 = vmatpush3.bf16.msra.mxu0 %v514_v17 }
  0x1e   :  { %517 = vmatprep.subr.bf16.mxu0 %v516_v21 }
  0x1f   :  { %491 = vmatpush3.bf16.msra.mxu1 %v490_v24 }
  0x20   :  { %493 = vmatprep.subr.bf16.mxu1 %v492_v27 }
  0x21   :  { %519 = vmatpush3.bf16.msra.mxu0 %v518_v30 }
  0x22   :  { %521 = vmatprep.subr.bf16.mxu0 %v520_v31 }
  0x23   :  { %495 = vmatpush3.bf16.msra.mxu1 %v494_v34 }
  0x25   :  { %523 = vmatpush3.bf16.msra.mxu0 %v522_v37 }
  0x26   :  { %525 = vmatprep.subr.bf16.mxu0 %v524_v38  ;;  %260 = vmatmul.mubr.f32.vlgmr.msra.gmra.mrb[0].mxu1 %v123_v41 }
  0x27   :  { %264 = vmatprep.mubr.f32.mxu1 %v128_v42 }
  0x29   :  { %527 = vmatpush3.bf16.msra.mxu0 %v526_v43 }
  0x2a   :  { %265 = vmatmul.mubr.f32.gmra.mrb[2].mxu1 %v127_v44 }
  0x2c   :  { %335 = vmatmul.mubr.f32.vlgmr.msra.gmra.mrb[2].mxu0 %v125_v45 }
  0x2d   :  { %339 = vmatprep.mubr.f32.mxu0 %v130_v46 }
  0x30   :  { %340 = vmatmul.mubr.f32.gmra.mrb[4].mxu0 %v129_v47 }
  0xdf   :  { %v455_v48 = vpop.f32.mrb[0].mxu0 }
  0xe0   :  { %v110_v49 = vpop.f32.mrb[1].mxu0  ;;  %v116_v2 = vadd.f32 %v455_v48, %v360_v57 }
  0xe1   :  { %v111_v60 = vadd.f32 %v360_v57, %v110_v49 }
  0xf9   :  { %v401_v50 = vpop.f32.mrb[0].mxu1 }
  0xfa   :  { %v402_v51 = vpop.f32.mrb[1].mxu1 }
  0xfb   :  { %v403_v52 = vadd.f32 %v402_v51, %v401_v50 }
  0xfd   :  { %v404_v53 = vpop.f32.mrb[2].mxu1 }
  0xfe   :  { %v405_v54 = vpop.f32.mrb[3].mxu1 }
  0xff   :  { %v439_v55 = vpop.f32.mrb[2].mxu0  ;;  %v406_v56 = vadd.f32 %v405_v54, %v404_v53 }
 0x100   :  { %v440_v58 = vpop.f32.mrb[3].mxu0 }
 0x101   :  { %v441_v59 = vadd.f32 %v440_v58, %v439_v55 }
 0x103   :  { %v337_v61 = vadd.f32 %v441_v59, %v403_v52  ;;  %v442_v62 = vpop.f32.mrb[4].mxu0 }
 0x104   :  { %v443_v63 = vpop.f32.mrb[5].mxu0 }
 0x105   :  { %v345_v0 = vadd.f32 %v337_v61, %v111_v60  ;;  %v444_v1 = vadd.f32 %v443_v63, %v442_v62 }
 0x107   :  { %354 = vst [vmem:[%s808_s5] sm:$0xff] %v345_v0  ;;  %v342_v3 = vadd.f32 %v444_v1, %v406_v56 }
 0x109   :  { %v346_v4 = vadd.f32 %v342_v3, %v116_v2 }
 0x10b   :  { %355 = vst [vmem:[%s808_s5 + $0x8] sm:$0xff] %v346_v4 }

</bundles_post_ra>
